<compile_context>
chip_gen: v6e
topology: v6e:2x2x1
jax: 0.10.0
libtpu: 0.0.40
codegen_flags: <defaults>
</compile_context>

<pallas_src>
import functools

import jax
import jax.numpy as jnp
from jax import lax
from jax.experimental import pallas as pl
from jax.experimental.pallas import tpu as pltpu

LEAKY_SLOPE = 0.01        # nn.LeakyReLU default
BN_EPS = 1e-5             # nn.BatchNorm2d default
KSIZE = 5
VMEM_LIMIT = 48 * 1024 * 1024   # headroom over v5e's 16 MiB scoped default,
                                # still < v7x physical (64 MiB)


def _cparams():
    return pltpu.CompilerParams(dimension_semantics=("arbitrary",),
                                vmem_limit_bytes=VMEM_LIMIT)


# ---------------------------------------------------------------------------
# In-kernel helpers (traced jnp code shared by the kernels)
# ---------------------------------------------------------------------------
def _bn_act(x, gamma, beta, activation):
    """BatchNorm (batch stats over rows) + activation on an (M, C) f32 value."""
    mean = jnp.mean(x, axis=0, keepdims=True)
    var = jnp.mean((x - mean) ** 2, axis=0, keepdims=True)   # biased var (BN train)
    y = (x - mean) * lax.rsqrt(var + BN_EPS)
    y = y * gamma + beta
    if activation == "relu":
        y = jnp.maximum(y, 0.0)
    elif activation == "leaky_relu":
        y = jnp.where(y >= 0.0, y, y * LEAKY_SLOPE)
    return y


def _deconv_accumulate(x_ref, w_ref, B, OH, OW, k):
    """25-tap conv accumulation: x_ref (B,HP,WP,Cin), w_ref (k*k,Cin,Cout)."""
    Cin = x_ref.shape[3]
    Cout = w_ref.shape[2]
    M = B * OH * OW
    acc = jnp.zeros((M, Cout), jnp.float32)
    for ki in range(k):
        for kj in range(k):
            xs = x_ref[:, ki:ki + OH, kj:kj + OW, :]          # (B,OH,OW,Cin) f32
            xs = xs.reshape(M, Cin).astype(jnp.bfloat16)      # lane dim kept
            acc = acc + jnp.dot(xs, w_ref[ki * k + kj],
                                preferred_element_type=jnp.float32)
    return acc


# ---------------------------------------------------------------------------
# Pallas kernels (one fused kernel per network layer)
# ---------------------------------------------------------------------------
def _gemm_bn_act_kernel(cols_ref, w_ref, b_ref, g_ref, be_ref, o_ref,
                        *, activation):
    acc = jnp.dot(cols_ref[...], w_ref[...],
                  preferred_element_type=jnp.float32) + b_ref[...]
    o_ref[...] = _bn_act(acc, g_ref[...], be_ref[...],
                         activation).astype(o_ref.dtype)


def _bn_act_kernel(x_ref, g_ref, be_ref, o_ref, *, activation):
    o_ref[...] = _bn_act(x_ref[...].astype(jnp.float32), g_ref[...], be_ref[...],
                         activation).astype(o_ref.dtype)


def _deconv_bn_act_kernel(x_ref, w_ref, b_ref, g_ref, be_ref, o_ref,
                          *, B, OH, OW, k, activation):
    acc = _deconv_accumulate(x_ref, w_ref, B, OH, OW, k) + b_ref[...]
    o_ref[...] = _bn_act(acc, g_ref[...], be_ref[...],
                         activation).astype(o_ref.dtype)


def _deconv_bn_act_merge_kernel(x_ref, w_ref, b_ref, g_ref, be_ref,
                                wm_ref, bm_ref, o_ref,
                                *, B, OH, OW, k, activation):
    acc = _deconv_accumulate(x_ref, w_ref, B, OH, OW, k) + b_ref[...]
    y = _bn_act(acc, g_ref[...], be_ref[...], activation)
    # fused 1x1 merger conv + sigmoid epilogue
    m = jnp.dot(y, wm_ref[...], preferred_element_type=jnp.float32) + bm_ref[...]
    o_ref[...] = jax.nn.sigmoid(m).astype(o_ref.dtype)


# ---------------------------------------------------------------------------
# Layer wrappers (channels-last NHWC in / out)
# ---------------------------------------------------------------------------
def conv_bn_act(x, w, b, gamma, beta, *, stride, pad, activation):
    """Fused Conv2d(stride, pad) + BN + activation. x: (B,H,W,Cin) NHWC."""
    B, H, W, Cin = x.shape
    Cout, _, k, _ = w.shape
    xp = jnp.pad(x, ((0, 0), (pad, pad), (pad, pad), (0, 0)))
    OH = (H + 2 * pad - k) // stride + 1
    OW = (W + 2 * pad - k) // stride + 1
    taps = [xp[:, ki:ki + stride * OH:stride, kj:kj + stride * OW:stride, :]
            for ki in range(k) for kj in range(k)]
    cols = jnp.stack(taps, axis=3).reshape(B * OH * OW, k * k * Cin)
    wmat = jnp.transpose(w, (2, 3, 1, 0)).reshape(k * k * Cin, Cout)
    M = B * OH * OW
    Kd = k * k * Cin
    out = pl.pallas_call(
        functools.partial(_gemm_bn_act_kernel, activation=activation),
        out_shape=jax.ShapeDtypeStruct((M, Cout), jnp.float32),
        grid=(1,),
        in_specs=[
            pl.BlockSpec((M, Kd), lambda i: (0, 0)),
            pl.BlockSpec((Kd, Cout), lambda i: (0, 0)),
            pl.BlockSpec((1, Cout), lambda i: (0, 0)),
            pl.BlockSpec((1, Cout), lambda i: (0, 0)),
            pl.BlockSpec((1, Cout), lambda i: (0, 0)),
        ],
        out_specs=pl.BlockSpec((M, Cout), lambda i: (0, 0)),
        compiler_params=_cparams(),
    )(cols.astype(jnp.bfloat16), wmat.astype(jnp.bfloat16),
      b.reshape(1, Cout).astype(jnp.float32),
      gamma.reshape(1, Cout).astype(jnp.float32),
      beta.reshape(1, Cout).astype(jnp.float32))
    return out.reshape(B, OH, OW, Cout)


def bn_act(x, gamma, beta, activation):
    """Fused BN + activation on NHWC x (used for the decoder's first BN)."""
    B, H, W, C = x.shape
    M = B * H * W
    out = pl.pallas_call(
        functools.partial(_bn_act_kernel, activation=activation),
        out_shape=jax.ShapeDtypeStruct((M, C), jnp.float32),
        grid=(1,),
        in_specs=[
            pl.BlockSpec((M, C), lambda i: (0, 0)),
            pl.BlockSpec((1, C), lambda i: (0, 0)),
            pl.BlockSpec((1, C), lambda i: (0, 0)),
        ],
        out_specs=pl.BlockSpec((M, C), lambda i: (0, 0)),
        compiler_params=_cparams(),
    )(x.reshape(M, C).astype(jnp.float32),
      gamma.reshape(1, C).astype(jnp.float32),
      beta.reshape(1, C).astype(jnp.float32))
    return out.reshape(B, H, W, C)


def deconv_bn_act(x, w, b, gamma, beta, *, stride=2, padding=2,
                  output_padding=1, activation="leaky_relu", merger=None):
    """Fused ConvTranspose2d + BN + activation (+ optional 1x1 merger+sigmoid).

    x: (B,H,W,Cin) NHWC; w: PyTorch layout (Cin, Cout, k, k).
    Returns (B, 2H, 2W, Cout) or (B, 2H, 2W, 1) if merger=(wm, bm) is given.
    """
    B, H, W, Cin = x.shape
    _, Cout, k, _ = w.shape
    # dilate by stride + asymmetric edge pad in one lax.pad (PyTorch-equivalent
    # forward conv of the zero-inserted input with a flipped kernel).
    p_lo = k - 1 - padding
    p_hi = k - 1 - padding + output_padding
    cfg = ((0, 0, 0), (p_lo, p_hi, stride - 1), (p_lo, p_hi, stride - 1),
           (0, 0, 0))
    xp = lax.pad(x.astype(jnp.float32), jnp.float32(0), cfg)
    HP, WP = xp.shape[1], xp.shape[2]
    OH = HP - k + 1
    OW = WP - k + 1
    M = B * OH * OW
    # (k*k, Cin, Cout) tap-major flipped weights for the equivalent fwd conv.
    w_taps = jnp.transpose(jnp.flip(w, axis=(2, 3)),
                           (2, 3, 0, 1)).reshape(k * k, Cin, Cout)

    in_specs = [
        pl.BlockSpec((B, HP, WP, Cin), lambda i: (0, 0, 0, 0)),
        pl.BlockSpec((k * k, Cin, Cout), lambda i: (0, 0, 0)),
        pl.BlockSpec((1, Cout), lambda i: (0, 0)),
        pl.BlockSpec((1, Cout), lambda i: (0, 0)),
        pl.BlockSpec((1, Cout), lambda i: (0, 0)),
    ]
    args = [xp, w_taps.astype(jnp.bfloat16),
            b.reshape(1, Cout).astype(jnp.float32),
            gamma.reshape(1, Cout).astype(jnp.float32),
            beta.reshape(1, Cout).astype(jnp.float32)]

    if merger is None:
        kern = functools.partial(_deconv_bn_act_kernel, B=B, OH=OH, OW=OW,
                                 k=k, activation=activation)
        out_shape = jax.ShapeDtypeStruct((M, Cout), jnp.float32)
        out_spec = pl.BlockSpec((M, Cout), lambda i: (0, 0))
        out_c = Cout
    else:
        wm, bm = merger
        kern = functools.partial(_deconv_bn_act_merge_kernel, B=B, OH=OH,
                                 OW=OW, k=k, activation=activation)
        out_shape = jax.ShapeDtypeStruct((M, 1), jnp.float32)
        out_spec = pl.BlockSpec((M, 1), lambda i: (0, 0))
        in_specs = in_specs + [
            pl.BlockSpec((Cout, 1), lambda i: (0, 0)),
            pl.BlockSpec((1, 1), lambda i: (0, 0)),
        ]
        args = args + [wm.reshape(Cout, 1).astype(jnp.float32),
                       bm.reshape(1, 1).astype(jnp.float32)]
        out_c = 1

    out = pl.pallas_call(
        kern,
        out_shape=out_shape,
        grid=(1,),
        in_specs=in_specs,
        out_specs=out_spec,
        compiler_params=_cparams(),
    )(*args)
    return out.reshape(B, OH, OW, out_c)


# ---------------------------------------------------------------------------
# ChamaeleoNet (small config) parameters + forward
# ---------------------------------------------------------------------------
SHAPE_CH = [(1, 16), (16, 32)]    # shape encoder conv (Cin, Cout)
APP_CH = [(1, 8), (8, 16)]        # appearance encoder conv (Cin, Cout)
DEC_CH = [(48, 48), (48, 24)]     # decoder conv-transpose (Cin, Cout)
FILTERS_MAX = 48                  # filters_max_shape + filters_max_app
FILTERS_START = 24                # filters_start_shape + filters_start_app


def init_params(key):
    def conv_init(k, cout, cin, kh, kw):
        k1, k2 = jax.random.split(k)
        s = 1.0 / ((cin * kh * kw) ** 0.5)
        w = jax.random.uniform(k1, (cout, cin, kh, kw), jnp.float32, -s, s)
        b = jax.random.uniform(k2, (cout,), jnp.float32, -s, s)
        return w, b

    def convT_init(k, cin, cout, kh, kw):
        k1, k2 = jax.random.split(k)
        s = 1.0 / ((cin * kh * kw) ** 0.5)
        w = jax.random.uniform(k1, (cin, cout, kh, kw), jnp.float32, -s, s)
        b = jax.random.uniform(k2, (cout,), jnp.float32, -s, s)
        return w, b

    def bn_init(k, c):
        k1, k2 = jax.random.split(k)
        g = 1.0 + 0.1 * jax.random.normal(k1, (c,), jnp.float32)
        be = 0.05 * jax.random.normal(k2, (c,), jnp.float32)
        return g, be

    keys = iter(jax.random.split(key, 32))
    params = {"shape_enc": [], "app_enc": [], "dec": []}
    for cin, cout in SHAPE_CH:
        w, b = conv_init(next(keys), cout, cin, KSIZE, KSIZE)
        g, be = bn_init(next(keys), cout)
        params["shape_enc"].append((w, b, g, be))
    for cin, cout in APP_CH:
        w, b = conv_init(next(keys), cout, cin, KSIZE, KSIZE)
        g, be = bn_init(next(keys), cout)
        params["app_enc"].append((w, b, g, be))
    params["dec_bn0"] = bn_init(next(keys), FILTERS_MAX)
    for cin, cout in DEC_CH:
        w, b = convT_init(next(keys), cin, cout, KSIZE, KSIZE)
        g, be = bn_init(next(keys), cout)
        params["dec"].append((w, b, g, be))
    params["merger"] = conv_init(next(keys), 1, FILTERS_START, 1, 1)
    return params


def chamaeleonet_forward(params, content, style):
    # NCHW -> NHWC once at the boundary.
    xc = jnp.transpose(content, (0, 2, 3, 1))
    xs = jnp.transpose(style, (0, 2, 3, 1))

    # shape encoder: (Conv s2 p2 -> BN -> LeakyReLU) x num_pooling
    z = xc
    for (w, b, g, be) in params["shape_enc"]:
        z = conv_bn_act(z, w, b, g, be, stride=2, pad=2,
                        activation="leaky_relu")
    content_feature = z                                   # (B, 8, 8, 32)

    # appearance encoder
    z = xs
    for (w, b, g, be) in params["app_enc"]:
        z = conv_bn_act(z, w, b, g, be, stride=2, pad=2,
                        activation="leaky_relu")
    zA = z                                                # (B, 8, 8, 16)

    # decode: cat(content, styles[-1]) -> BN/ReLU -> (deconv/BN/LeakyReLU)*
    x = jnp.concatenate([content_feature, zA], axis=-1)   # (B, 8, 8, 48)
    g0, b0 = params["dec_bn0"]
    x = bn_act(x, g0, b0, "relu")

    (w1, b1, g1, be1) = params["dec"][0]
    x = deconv_bn_act(x, w1, b1, g1, be1, activation="leaky_relu")  # (B,16,16,48)

    # last deconv + BN + LeakyReLU + 1x1 merger + sigmoid all fused.
    (w2, b2, g2, be2) = params["dec"][1]
    wM, bM = params["merger"]                             # (1,24,1,1), (1,)
    merged = deconv_bn_act(x, w2, b2, g2, be2, activation="leaky_relu",
                           merger=(wM.reshape(1, FILTERS_START).T, bM))
    # NHWC -> NCHW at the boundary only.
    stylized = jnp.transpose(merged, (0, 3, 1, 2))        # (B, 1, 32, 32)
    zS_out = jnp.transpose(content_feature, (0, 3, 1, 2))  # (B, 32, 8, 8)
    zA_out = jnp.transpose(zA, (0, 3, 1, 2))               # (B, 16, 8, 8)
    return stylized, zS_out, zA_out


if __name__ == "__main__":
    key = jax.random.PRNGKey(0)
    kc, ks = jax.random.split(key)
    content = jax.random.uniform(kc, (2, 1, 32, 32), jnp.float32)
    style = jax.random.uniform(ks, (2, 1, 32, 32), jnp.float32)

    params = init_params(jax.random.PRNGKey(42))
    stylized, zS, zA = chamaeleonet_forward(params, content, style)
    jax.block_until_ready(stylized)

    assert stylized.shape == (2, 1, 32, 32)
    assert zS.shape == (2, 32, 8, 8)
    assert zA.shape == (2, 16, 8, 8)
    assert bool(jnp.all(jnp.isfinite(stylized)))
    print("KERNEL_OK")
</pallas_src>

<mosaic_0001>
module attributes {stable_mosaic.version = 11 : i64} {
  func.func @_gemm_bn_act_kernel(%arg0: i32, %arg1: memref<512x25xbf16, #tpu.memory_space<vmem>>, %arg2: memref<25x16xbf16, #tpu.memory_space<vmem>>, %arg3: memref<1x16xf32, #tpu.memory_space<vmem>>, %arg4: memref<1x16xf32, #tpu.memory_space<vmem>>, %arg5: memref<1x16xf32, #tpu.memory_space<vmem>>, %arg6: memref<512x16xf32, #tpu.memory_space<vmem>>) attributes {dimension_semantics = [#tpu.dimension_semantics<arbitrary>], iteration_bounds = array<i64: 1>, scalar_prefetch = 0 : i64, scratch_operands = 0 : i64, tpu.core_type = #tpu.core_type<tc>, window_params = [{pipeline_mode = #tpu.pipeline_mode<synchronous>, transform_indices = @transform_0, window_bounds = array<i64: 512, 25>}, {pipeline_mode = #tpu.pipeline_mode<synchronous>, transform_indices = @transform_1, window_bounds = array<i64: 25, 16>}, {pipeline_mode = #tpu.pipeline_mode<synchronous>, transform_indices = @transform_2, window_bounds = array<i64: 1, 16>}, {pipeline_mode = #tpu.pipeline_mode<synchronous>, transform_indices = @transform_3, window_bounds = array<i64: 1, 16>}, {pipeline_mode = #tpu.pipeline_mode<synchronous>, transform_indices = @transform_4, window_bounds = array<i64: 1, 16>}, {pipeline_mode = #tpu.pipeline_mode<synchronous>, transform_indices = @transform_5, window_bounds = array<i64: 512, 16>}]} {
    %c0 = arith.constant 0 : index
    %c0_0 = arith.constant 0 : index
    %0 = vector.load %arg1[%c0, %c0_0] : memref<512x25xbf16, #tpu.memory_space<vmem>>, vector<512x25xbf16>
    %c0_1 = arith.constant 0 : index
    %c0_2 = arith.constant 0 : index
    %1 = vector.load %arg2[%c0_1, %c0_2] : memref<25x16xbf16, #tpu.memory_space<vmem>>, vector<25x16xbf16>
    %cst = arith.constant dense<0.000000e+00> : vector<512x16xf32>
    %2 = tpu.matmul %0, %1, %cst {dimension_numbers = #tpu.dot_dimension_numbers<[1], [0], [0], [1], [0, 0, 1, 1], [], []>} : vector<512x25xbf16>, vector<25x16xbf16>, vector<512x16xf32> -> vector<512x16xf32>
    %c0_3 = arith.constant 0 : index
    %c0_4 = arith.constant 0 : index
    %3 = vector.load %arg3[%c0_3, %c0_4] : memref<1x16xf32, #tpu.memory_space<vmem>>, vector<1x16xf32>
    %4 = vector.broadcast %3 : vector<1x16xf32> to vector<512x16xf32>
    %5 = arith.addf %2, %4 : vector<512x16xf32>
    %c0_5 = arith.constant 0 : index
    %c0_6 = arith.constant 0 : index
    %6 = vector.load %arg4[%c0_5, %c0_6] : memref<1x16xf32, #tpu.memory_space<vmem>>, vector<1x16xf32>
    %c0_7 = arith.constant 0 : index
    %c0_8 = arith.constant 0 : index
    %7 = vector.load %arg5[%c0_7, %c0_8] : memref<1x16xf32, #tpu.memory_space<vmem>>, vector<1x16xf32>
    %cst_9 = arith.constant dense<0.000000e+00> : vector<16xf32>
    %8 = vector.multi_reduction <add>, %5, %cst_9 [0] : vector<512x16xf32> to vector<16xf32>
    %9 = vector.shape_cast %8 : vector<16xf32> to vector<1x16xf32>
    %cst_10 = arith.constant 5.120000e+02 : f32
    %10 = vector.broadcast %cst_10 : f32 to vector<1x16xf32>
    %11 = arith.divf %9, %10 : vector<1x16xf32>
    %12 = vector.broadcast %11 : vector<1x16xf32> to vector<512x16xf32>
    %13 = arith.subf %5, %12 : vector<512x16xf32>
    %14 = arith.mulf %13, %13 : vector<512x16xf32>
    %cst_11 = arith.constant dense<0.000000e+00> : vector<16xf32>
    %15 = vector.multi_reduction <add>, %14, %cst_11 [0] : vector<512x16xf32> to vector<16xf32>
    %16 = vector.shape_cast %15 : vector<16xf32> to vector<1x16xf32>
    %cst_12 = arith.constant 5.120000e+02 : f32
    %17 = vector.broadcast %cst_12 : f32 to vector<1x16xf32>
    %18 = arith.divf %16, %17 : vector<1x16xf32>
    %19 = vector.broadcast %11 : vector<1x16xf32> to vector<512x16xf32>
    %20 = arith.subf %5, %19 : vector<512x16xf32>
    %cst_13 = arith.constant 9.99999974E-6 : f32
    %21 = vector.broadcast %cst_13 : f32 to vector<1x16xf32>
    %22 = arith.addf %18, %21 : vector<1x16xf32>
    %23 = math.rsqrt %22 : vector<1x16xf32>
    %24 = vector.broadcast %23 : vector<1x16xf32> to vector<512x16xf32>
    %25 = arith.mulf %20, %24 : vector<512x16xf32>
    %26 = vector.broadcast %6 : vector<1x16xf32> to vector<512x16xf32>
    %27 = arith.mulf %25, %26 : vector<512x16xf32>
    %28 = vector.broadcast %7 : vector<1x16xf32> to vector<512x16xf32>
    %29 = arith.addf %27, %28 : vector<512x16xf32>
    %cst_14 = arith.constant 0.000000e+00 : f32
    %30 = vector.broadcast %cst_14 : f32 to vector<512x16xf32>
    %31 = arith.cmpf oge, %29, %30 : vector<512x16xf32>
    %cst_15 = arith.constant 0.00999999977 : f32
    %32 = vector.broadcast %cst_15 : f32 to vector<512x16xf32>
    %33 = arith.mulf %29, %32 : vector<512x16xf32>
    %34 = arith.select %31, %29, %33 : vector<512x16xi1>, vector<512x16xf32>
    %c0_16 = arith.constant 0 : index
    %c0_17 = arith.constant 0 : index
    %35 = vector.load %arg6[%c0_16, %c0_17] : memref<512x16xf32, #tpu.memory_space<vmem>>, vector<512x16xf32>
    tpu.vector_store %arg6[%c0_16, %c0_17], %34 {strides = array<i32>} : memref<512x16xf32, #tpu.memory_space<vmem>>, vector<512x16xf32>,
    return
  }
  func.func @transform_0(%arg0: i32) -> (i32, i32) {
    %c0_i32 = arith.constant 0 : i32
    %c0_i32_0 = arith.constant 0 : i32
    %c0_i32_1 = arith.constant 0 : i32
    return %c0_i32, %c0_i32_0 : i32, i32
  }
  func.func @transform_1(%arg0: i32) -> (i32, i32) {
    %c0_i32 = arith.constant 0 : i32
    %c0_i32_0 = arith.constant 0 : i32
    %c0_i32_1 = arith.constant 0 : i32
    return %c0_i32, %c0_i32_0 : i32, i32
  }
  func.func @transform_2(%arg0: i32) -> (i32, i32) {
    %c0_i32 = arith.constant 0 : i32
    %c0_i32_0 = arith.constant 0 : i32
    %c0_i32_1 = arith.constant 0 : i32
    return %c0_i32, %c0_i32_0 : i32, i32
  }
  func.func @transform_3(%arg0: i32) -> (i32, i32) {
    %c0_i32 = arith.constant 0 : i32
    %c0_i32_0 = arith.constant 0 : i32
    %c0_i32_1 = arith.constant 0 : i32
    return %c0_i32, %c0_i32_0 : i32, i32
  }
  func.func @transform_4(%arg0: i32) -> (i32, i32) {
    %c0_i32 = arith.constant 0 : i32
    %c0_i32_0 = arith.constant 0 : i32
    %c0_i32_1 = arith.constant 0 : i32
    return %c0_i32, %c0_i32_0 : i32, i32
  }
  func.func @transform_5(%arg0: i32) -> (i32, i32) {
    %c0_i32 = arith.constant 0 : i32
    %c0_i32_0 = arith.constant 0 : i32
    %c0_i32_1 = arith.constant 0 : i32
    return %c0_i32, %c0_i32_0 : i32, i32
  }
}

</mosaic_0001>

<bundles_post_ra>
// kernel: tpu_custom_call.1
= control target key start
LH: loop header
LB: loop body
LE: loop exit
PB: predicated region body
PF: predicated region fallthrough
CT: control target
= control target key end

     0   :  { %vm364_vm0 = vcmask 1043456   ;;  %vm365_vm1 = vcmask 1044480   ;;  %v1738_v1 = vmov 65535   ;;  %vm267_vm2 = vcmask 203776   ;;  %s4244_s1 = inlined_call_operand.vmem [shape: bf16[25,16], index: 1, kind: input, shape index: {}]   ;;  %s4245_s0 = inlined_call_operand.vmem [shape: bf16[512,25], index: 0, kind: input, shape index: {}]   ;;  %s4246_s2 = inlined_call_operand.vmem [shape: f32[1,16], index: 2, kind: input, shape index: {}]   ;;  %s4247_s3 = inlined_call_operand.vmem [shape: f32[1,16], index: 3, kind: input, shape index: {}]   ;;  %s4248_s4 = inlined_call_operand.vmem [shape: f32[1,16], index: 4, kind: input, shape index: {}]   ;;  %s4249_s5 = inlined_call_operand.vmem [shape: f32[512,16], index: 5, kind: output, shape index: {}]  }
   0x1   :  { %v1702_v0 = vld [vmem:[%s4244_s1 + $0x8] sm:$0x1f]   ;;  %v366_v2 = vsel %vm364_vm0, 4294967295, %v1738_v1  ;;  %v1704_v4 = vld [vmem:[%s4245_s0] sm:$0xff]   ;;  %v1706_v8 = vld [vmem:[%s4245_s0 + $0x10] sm:$0xff]   ;;  %vm662_vm3 = vcmask 130048  }
   0x2   :  { %v367_v3 = vsel %vm365_vm1, %v366_v2, 0  ;;  %v1703_v6 = vld [vmem:[%s4244_s1] sm:$0xff]   ;;  %1633 = vmatprep.mubr.msk.bf16.mxu0 %vm267_vm2, %v1704_v4  ;;  %v1705_v7 = vld [vmem:[%s4245_s0 + $0x8] sm:$0xff]   ;;  %v1707_v9 = vld [vmem:[%s4245_s0 + $0x18] sm:$0xff]  }
   0x3   :  { %v369_v5 = vand.u32 %v1702_v0, %v367_v3  ;;  %v1708_v10 = vld [vmem:[%s4245_s0 + $0x20] sm:$0xff]   ;;  %v1721_v12 = vld [vmem:[%s4245_s0 + $0x88] sm:$0xff]   ;;  %v1722_v13 = vld [vmem:[%s4245_s0 + $0x90] sm:$0xff]  }
   0x4   :  { %v1720_v11 = vld [vmem:[%s4245_s0 + $0x80] sm:$0xff]   ;;  %v1709_v14 = vld [vmem:[%s4245_s0 + $0x28] sm:$0xff]   ;;  %v1710_v15 = vld [vmem:[%s4245_s0 + $0x30] sm:$0xff]  }
   0x5   :  { %1629 = vmatprep.subr.bf16.mxu0 %v369_v5  ;;  %1697 = vmatprep.subr.bf16.mxu1 %v369_v5  ;;  %v1723_v16 = vld [vmem:[%s4245_s0 + $0x98] sm:$0xff]   ;;  %v1724_v17 = vld [vmem:[%s4245_s0 + $0xa0] sm:$0xff]   ;;  %v1725_v19 = vld [vmem:[%s4245_s0 + $0xa8] sm:$0xff]  }
   0x6   :  { %1630 = vmatpush3.bf16.msra.mxu0 %v369_v5  ;;  %1699 = vmatpush3.bf16.msra.mxu1 %v369_v5  ;;  %v1711_v18 = vld [vmem:[%s4245_s0 + $0x38] sm:$0xff]   ;;  %v1712_v20 = vld [vmem:[%s4245_s0 + $0x40] sm:$0xff]   ;;  %v1726_v21 = vld [vmem:[%s4245_s0 + $0xb0] sm:$0xff]  }
   0x7   :  { %1631 = vmatprep.subr.bf16.mxu0 %v1703_v6  ;;  %1698 = vmatprep.subr.bf16.mxu1 %v1703_v6  ;;  %v1713_v22 = vld [vmem:[%s4245_s0 + $0x48] sm:$0xff]   ;;  %v1727_v23 = vld [vmem:[%s4245_s0 + $0xb8] sm:$0xff]   ;;  %v1714_v24 = vld [vmem:[%s4245_s0 + $0x50] sm:$0xff]  }
   0x8   :  { %1665 = vmatprep.mubr.msk.bf16.mxu1 %vm267_vm2, %v1720_v11  ;;  %v1728_v25 = vld [vmem:[%s4245_s0 + $0xc0] sm:$0xff]   ;;  %v1715_v26 = vld [vmem:[%s4245_s0 + $0x58] sm:$0xff]   ;;  %v1729_v27 = vld [vmem:[%s4245_s0 + $0xc8] sm:$0xff]  }
   0x9   :  { %v1716_v28 = vld [vmem:[%s4245_s0 + $0x60] sm:$0xff]   ;;  %v1730_v29 = vld [vmem:[%s4245_s0 + $0xd0] sm:$0xff]   ;;  %v1717_v30 = vld [vmem:[%s4245_s0 + $0x68] sm:$0xff]  }
   0xa   :  { %1632 = vmatpush3.bf16.msra.mxu0 %v1703_v6  ;;  %1700 = vmatpush3.bf16.msra.mxu1 %v1703_v6  ;;  %v1731_v31 = vld [vmem:[%s4245_s0 + $0xd8] sm:$0xff]   ;;  %v1718_v32 = vld [vmem:[%s4245_s0 + $0x70] sm:$0xff]   ;;  %v1732_v33 = vld [vmem:[%s4245_s0 + $0xe0] sm:$0xff]  }
   0xb   :  { %v1719_v34 = vld [vmem:[%s4245_s0 + $0x78] sm:$0xff]   ;;  %v1733_v35 = vld [vmem:[%s4245_s0 + $0xe8] sm:$0xff]   ;;  %v1734_v36 = vld [vmem:[%s4245_s0 + $0xf0] sm:$0xff]  }
   0xc   :  { %v1735_v37 = vld [vmem:[%s4245_s0 + $0xf8] sm:$0xff]   ;;  %v1906_v40 = vld [vmem:[%s4246_s2] ss:$0 sm:$0xff] }
   0xd   :  { %1634 = vmatmul.mubr.msk.bf16.vlgmr.msra.gmra.mxu0 %vm267_vm2, %v1705_v7  ;;  %1666 = vmatmul.mubr.msk.bf16.vlgmr.msra.gmra.mxu1 %vm267_vm2, %v1721_v12 }
   0xe   :  { %1637 = vmatprep.mubr.msk.bf16.mxu0 %vm267_vm2, %v1706_v8  ;;  %1669 = vmatprep.mubr.msk.bf16.mxu1 %vm267_vm2, %v1722_v13 }
  0x15   :  { %1638 = vmatmul.mubr.msk.bf16.gmra.mxu0 %vm267_vm2, %v1707_v9  ;;  %1670 = vmatmul.mubr.msk.bf16.gmra.mxu1 %vm267_vm2, %v1723_v16 }
  0x16   :  { %1641 = vmatprep.mubr.msk.bf16.mxu0 %vm267_vm2, %v1708_v10  ;;  %1673 = vmatprep.mubr.msk.bf16.mxu1 %vm267_vm2, %v1724_v17 }
  0x1d   :  { %1642 = vmatmul.mubr.msk.bf16.gmra.mxu0 %vm267_vm2, %v1709_v14  ;;  %1674 = vmatmul.mubr.msk.bf16.gmra.mxu1 %vm267_vm2, %v1725_v19 }
  0x1e   :  { %1645 = vmatprep.mubr.msk.bf16.mxu0 %vm267_vm2, %v1710_v15  ;;  %1677 = vmatprep.mubr.msk.bf16.mxu1 %vm267_vm2, %v1726_v21 }
  0x25   :  { %1646 = vmatmul.mubr.msk.bf16.gmra.mxu0 %vm267_vm2, %v1711_v18  ;;  %1678 = vmatmul.mubr.msk.bf16.gmra.mxu1 %vm267_vm2, %v1727_v23 }
  0x26   :  { %1649 = vmatprep.mubr.msk.bf16.mxu0 %vm267_vm2, %v1712_v20  ;;  %1681 = vmatprep.mubr.msk.bf16.mxu1 %vm267_vm2, %v1728_v25 }
  0x2d   :  { %1650 = vmatmul.mubr.msk.bf16.gmra.mxu0 %vm267_vm2, %v1713_v22  ;;  %1682 = vmatmul.mubr.msk.bf16.gmra.mxu1 %vm267_vm2, %v1729_v27 }
  0x2e   :  { %1653 = vmatprep.mubr.msk.bf16.mxu0 %vm267_vm2, %v1714_v24  ;;  %1685 = vmatprep.mubr.msk.bf16.mxu1 %vm267_vm2, %v1730_v29 }
  0x35   :  { %1654 = vmatmul.mubr.msk.bf16.gmra.mxu0 %vm267_vm2, %v1715_v26  ;;  %1686 = vmatmul.mubr.msk.bf16.gmra.mxu1 %vm267_vm2, %v1731_v31 }
  0x36   :  { %1657 = vmatprep.mubr.msk.bf16.mxu0 %vm267_vm2, %v1716_v28  ;;  %1689 = vmatprep.mubr.msk.bf16.mxu1 %vm267_vm2, %v1732_v33 }
  0x3d   :  { %1658 = vmatmul.mubr.msk.bf16.gmra.mxu0 %vm267_vm2, %v1717_v30  ;;  %1690 = vmatmul.mubr.msk.bf16.gmra.mxu1 %vm267_vm2, %v1733_v35 }
  0x3e   :  { %1661 = vmatprep.mubr.msk.bf16.mxu0 %vm267_vm2, %v1718_v32  ;;  %1693 = vmatprep.mubr.msk.bf16.mxu1 %vm267_vm2, %v1734_v36 }
  0x45   :  { %1662 = vmatmul.mubr.msk.bf16.gmra.mxu0 %vm267_vm2, %v1719_v34  ;;  %1694 = vmatmul.mubr.msk.bf16.gmra.mxu1 %vm267_vm2, %v1735_v37 }
  0xcd   :  { %v1635_v38 = vpop.f32.mrf.mxu0  ;;  %v1917_v47 = vpop.f32.mrf.mxu1 }
  0xce   :  { %v1912_v44 = vadd.f32 %v1635_v38, %v1906_v40 }
  0xcf   :  { %v405_v39 = vpop.f32.mrf.mxu0  ;;  %v1926_v53 = vpop.f32.mrf.mxu1 }
  0xd0   :  { %v1909_v42 = vadd.f32 %v1906_v40, %v405_v39  ;;  %v666_v54 = vsel %vm662_vm3, %v1912_v44, 0.0 }
  0xd1   :  { %v1636_v41 = vpop.f32.mrf.mxu0  ;;  %v1933_v58 = vpop.f32.mrf.mxu1 }
  0xd2   :  { %v663_v48 = vsel %vm662_vm3, %v1909_v42, 0.0  ;;  %v1922_v49 = vadd.f32 %v1636_v41, %v1906_v40 }
  0xd3   :  { %v408_v43 = vpop.f32.mrf.mxu0  ;;  %v1937_v62 = vpop.f32.mrf.mxu1 }
  0xd4   :  { %v1915_v45 = vadd.f32 %v1906_v40, %v408_v43  ;;  %v668_v59 = vsel %vm662_vm3, %v1922_v49, 0.0 }
  0xd5   :  { %v1639_v46 = vpop.f32.mrf.mxu0  ;;  %v1952_v8 = vpop.f32.mrf.mxu1 }
  0xd6   :  { %v664_v50 = vsel %vm662_vm3, %v1915_v45, 0.0  ;;  %v1940_v63 = vadd.f32 %v1639_v46, %v1906_v40 }
  0xd7   :  { %v665_v51 = vadd.f32 %v664_v50, %v663_v48  ;;  %v421_v52 = vpop.f32.mrf.mxu0  ;;  %v1961_v16 = vpop.f32.mrf.mxu1 }
  0xd8   :  { %v1931_v55 = vadd.f32 %v1906_v40, %v421_v52  ;;  %v674_v9 = vsel %vm662_vm3, %v1940_v63, 0.0 }
  0xd9   :  { %v667_v56 = vadd.f32 %v666_v54, %v665_v51  ;;  %v1640_v57 = vpop.f32.mrf.mxu0  ;;  %v1976_v26 = vpop.f32.mrf.mxu1 }
  0xda   :  { %v670_v0 = vsel %vm662_vm3, %v1931_v55, 0.0  ;;  %v1948_v4 = vadd.f32 %v1640_v57, %v1906_v40 }
  0xdb   :  { %v669_v60 = vadd.f32 %v668_v59, %v667_v56  ;;  %v424_v61 = vpop.f32.mrf.mxu0  ;;  %v1985_v34 = vpop.f32.mrf.mxu1 }
  0xdc   :  { %v1945_v1 = vadd.f32 %v1906_v40, %v424_v61  ;;  %v676_v13 = vsel %vm662_vm3, %v1948_v4, 0.0 }
  0xdd   :  { %v671_v2 = vadd.f32 %v670_v0, %v669_v60  ;;  %v1643_v3 = vpop.f32.mrf.mxu0  ;;  %v2000_v50 = vpop.f32.mrf.mxu1 }
  0xde   :  { %v672_v5 = vsel %vm662_vm3, %v1945_v1, 0.0  ;;  %v1964_v17 = vadd.f32 %v1643_v3, %v1906_v40 }
  0xdf   :  { %v673_v6 = vadd.f32 %v672_v5, %v671_v2  ;;  %v437_v7 = vpop.f32.mrf.mxu0  ;;  %v2009_v61 = vpop.f32.mrf.mxu1 }
  0xe0   :  { %v1957_v10 = vadd.f32 %v1906_v40, %v437_v7  ;;  %v682_v27 = vsel %vm662_vm3, %v1964_v17, 0.0 }
  0xe1   :  { %v675_v11 = vadd.f32 %v674_v9, %v673_v6  ;;  %v1644_v12 = vpop.f32.mrf.mxu0 }
  0xe2   :  { %v678_v18 = vsel %vm662_vm3, %v1957_v10, 0.0  ;;  %v1972_v22 = vadd.f32 %v1644_v12, %v1906_v40 }
  0xe3   :  { %v677_v14 = vadd.f32 %v676_v13, %v675_v11  ;;  %v440_v15 = vpop.f32.mrf.mxu0  ;;  %v2024_v13 = vpop.f32.mrf.mxu1 }
  0xe4   :  { %v1969_v19 = vadd.f32 %v1906_v40, %v440_v15  ;;  %v684_v31 = vsel %vm662_vm3, %v1972_v22, 0.0 }
  0xe5   :  { %v679_v20 = vadd.f32 %v678_v18, %v677_v14  ;;  %v1647_v21 = vpop.f32.mrf.mxu0 }
  0xe6   :  { %v680_v23 = vsel %vm662_vm3, %v1969_v19, 0.0  ;;  %v1988_v35 = vadd.f32 %v1647_v21, %v1906_v40 }
  0xe7   :  { %v681_v24 = vadd.f32 %v680_v23, %v679_v20  ;;  %v453_v25 = vpop.f32.mrf.mxu0 }
  0xe8   :  { %v1981_v28 = vadd.f32 %v1906_v40, %v453_v25  ;;  %v690_v51 = vsel %vm662_vm3, %v1988_v35, 0.0  ;;  %v2033_v25 = vpop.f32.mrf.mxu1 }
  0xe9   :  { %v683_v29 = vadd.f32 %v682_v27, %v681_v24  ;;  %v1648_v30 = vpop.f32.mrf.mxu0 }
  0xea   :  { %v686_v36 = vsel %vm662_vm3, %v1981_v28, 0.0  ;;  %v1996_v41 = vadd.f32 %v1648_v30, %v1906_v40 }
  0xeb   :  { %v685_v32 = vadd.f32 %v684_v31, %v683_v29  ;;  %v456_v33 = vpop.f32.mrf.mxu0 }
  0xec   :  { %v1993_v37 = vadd.f32 %v1906_v40, %v456_v33  ;;  %v692_v57 = vsel %vm662_vm3, %v1996_v41, 0.0 }
  0xed   :  { %v687_v38 = vadd.f32 %v686_v36, %v685_v32  ;;  %v1651_v39 = vpop.f32.mrf.mxu0 }
  0xee   :  { %v688_v43 = vsel %vm662_vm3, %v1993_v37, 0.0  ;;  %v2012_v0 = vadd.f32 %v1651_v39, %v1906_v40 }
  0xef   :  { %v689_v46 = vadd.f32 %v688_v43, %v687_v38  ;;  %v469_v48 = vpop.f32.mrf.mxu0  ;;  %v2048_v43 = vpop.f32.mrf.mxu1 }
  0xf0   :  { %v2005_v52 = vadd.f32 %v1906_v40, %v469_v48  ;;  %v698_v14 = vsel %vm662_vm3, %v2012_v0, 0.0 }
  0xf1   :  { %v691_v54 = vadd.f32 %v690_v51, %v689_v46  ;;  %v1652_v56 = vpop.f32.mrf.mxu0 }
  0xf2   :  { %v694_v2 = vsel %vm662_vm3, %v2005_v52, 0.0  ;;  %v2020_v7 = vadd.f32 %v1652_v56, %v1906_v40 }
  0xf3   :  { %v693_v59 = vadd.f32 %v692_v57, %v691_v54  ;;  %v472_v60 = vpop.f32.mrf.mxu0 }
  0xf4   :  { %v2017_v3 = vadd.f32 %v1906_v40, %v472_v60  ;;  %v700_v21 = vsel %vm662_vm3, %v2020_v7, 0.0  ;;  %v2057_v60 = vpop.f32.mrf.mxu1 }
  0xf5   :  { %v695_v5 = vadd.f32 %v694_v2, %v693_v59  ;;  %v1655_v6 = vpop.f32.mrf.mxu0 }
  0xf6   :  { %v696_v9 = vsel %vm662_vm3, %v2017_v3, 0.0  ;;  %v2036_v27 = vadd.f32 %v1655_v6, %v1906_v40 }
  0xf7   :  { %v697_v11 = vadd.f32 %v696_v9, %v695_v5  ;;  %v485_v12 = vpop.f32.mrf.mxu0 }
  0xf8   :  { %v2029_v15 = vadd.f32 %v1906_v40, %v485_v12  ;;  %v706_v46 = vsel %vm662_vm3, %v2036_v27, 0.0 }
  0xf9   :  { %v699_v18 = vadd.f32 %v698_v14, %v697_v11  ;;  %v1656_v20 = vpop.f32.mrf.mxu0 }
  0xfa   :  { %v702_v29 = vsel %vm662_vm3, %v2029_v15, 0.0  ;;  %v2044_v33 = vadd.f32 %v1656_v20, %v1906_v40 }
  0xfb   :  { %v701_v23 = vadd.f32 %v700_v21, %v699_v18  ;;  %v488_v24 = vpop.f32.mrf.mxu0  ;;  %v2072_v21 = vpop.f32.mrf.mxu1 }
  0xfc   :  { %v2041_v30 = vadd.f32 %v1906_v40, %v488_v24  ;;  %v708_v56 = vsel %vm662_vm3, %v2044_v33, 0.0 }
  0xfd   :  { %v703_v31 = vadd.f32 %v702_v29, %v701_v23  ;;  %v1659_v32 = vpop.f32.mrf.mxu0 }
  0xfe   :  { %v704_v36 = vsel %vm662_vm3, %v2041_v30, 0.0  ;;  %v2060_v2 = vadd.f32 %v1659_v32, %v1906_v40 }
  0xff   :  { %v705_v38 = vadd.f32 %v704_v36, %v703_v31  ;;  %v501_v39 = vpop.f32.mrf.mxu0 }
 0x100   :  { %v2053_v48 = vadd.f32 %v1906_v40, %v501_v39  ;;  %v714_v23 = vsel %vm662_vm3, %v2060_v2, 0.0  ;;  %v584_v39 = vpop.f32.mrf.mxu1 }
 0x101   :  { %v707_v51 = vadd.f32 %v706_v46, %v705_v38  ;;  %v1660_v54 = vpop.f32.mrf.mxu0 }
 0x102   :  { %v710_v5 = vsel %vm662_vm3, %v2053_v48, 0.0  ;;  %v2068_v12 = vadd.f32 %v1660_v54, %v1906_v40 }
 0x103   :  { %v709_v57 = vadd.f32 %v708_v56, %v707_v51  ;;  %v504_v59 = vpop.f32.mrf.mxu0 }
 0x104   :  { %v2065_v6 = vadd.f32 %v1906_v40, %v504_v59  ;;  %v716_v32 = vsel %vm662_vm3, %v2068_v12, 0.0 }
 0x105   :  { %v711_v9 = vadd.f32 %v710_v5, %v709_v57  ;;  %v1663_v11 = vpop.f32.mrf.mxu0 }
 0x106   :  { %v712_v14 = vsel %vm662_vm3, %v2065_v6, 0.0  ;;  %v2082_v46 = vadd.f32 %v1663_v11, %v1906_v40 }
 0x107   :  { %v713_v18 = vadd.f32 %v712_v14, %v711_v9  ;;  %v517_v20 = vpop.f32.mrf.mxu0  ;;  %v2094_v9 = vpop.f32.mrf.mxu1  ;;  %v2100_v14 = vadd.f32 %v1906_v40, %v1926_v53  ;;  %v2116_v53 = vadd.f32 %v1933_v58, %v1906_v40  ;;  %v2130_v58 = vadd.f32 %v1906_v40, %v1985_v34 }
 0x108   :  { %v2077_v24 = vadd.f32 %v1906_v40, %v517_v20  ;;  %v722_v11 = vsel %vm662_vm3, %v2082_v46, 0.0 }
 0x109   :  { %v715_v29 = vadd.f32 %v714_v23, %v713_v18  ;;  %v1664_v31 = vpop.f32.mrf.mxu0  ;;  %v2106_v23 = vadd.f32 %v1906_v40, %v1937_v62 }
 0x10a   :  { %v718_v51 = vsel %vm662_vm3, %v2077_v24, 0.0  ;;  %v2090_v57 = vadd.f32 %v1664_v31, %v1906_v40  ;;  %v597_v31 = vpop.f32.mrf.mxu1 }
 0x10b   :  { %v717_v36 = vadd.f32 %v716_v32, %v715_v29  ;;  %v520_v38 = vpop.f32.mrf.mxu0  ;;  %v2110_v32 = vadd.f32 %v1917_v47, %v1906_v40  ;;  %v2124_v47 = vadd.f32 %v1906_v40, %v1961_v16  ;;  %v2140_v16 = vadd.f32 %v1976_v26, %v1906_v40 }
 0x10c   :  { %v2087_v54 = vadd.f32 %v1906_v40, %v520_v38  ;;  %v724_v20 = vsel %vm662_vm3, %v2090_v57, 0.0  ;;  %v1684_v62 = vpop.f32.mrf.mxu1  ;;  %v2154_v26 = vadd.f32 %v1906_v40, %v2033_v25 }
 0x10d   :  { %v719_v56 = vadd.f32 %v718_v51, %v717_v36  ;;  %v726_v36 = vsel %vm662_vm3, %v2100_v14, 0.0  ;;  %v728_v51 = vsel %vm662_vm3, %v2106_v23, 0.0 }
 0x10e   :  { %v720_v59 = vsel %vm662_vm3, %v2087_v54, 0.0 }
 0x10f   :  { %v721_v5 = vadd.f32 %v720_v59, %v719_v56  ;;  %v730_v59 = vsel %vm662_vm3, %v2110_v32, 0.0 }
 0x111   :  { %v723_v18 = vadd.f32 %v722_v11, %v721_v5  ;;  %v732_v11 = vsel %vm662_vm3, %v2116_v53, 0.0 }
 0x113   :  { %v725_v29 = vadd.f32 %v724_v20, %v723_v18  ;;  %v600_v20 = vpop.f32.mrf.mxu1 }
 0x115   :  { %v727_v38 = vadd.f32 %v726_v36, %v725_v29  ;;  %v2134_v29 = vadd.f32 %v1952_v8, %v1906_v40  ;;  %v734_v36 = vsel %vm662_vm3, %v2124_v47, 0.0  ;;  %v1687_v34 = vpop.f32.mrf.mxu1  ;;  %v2148_v8 = vadd.f32 %v1906_v40, %v2009_v61 }
 0x116   :  { %v2164_v61 = vadd.f32 %v2024_v13, %v1906_v40 }
 0x117   :  { %v729_v56 = vadd.f32 %v728_v51, %v727_v38  ;;  %4308 = vst [vmem:[#allocation2_spill] sm:$0xff] %v2134_v29  ;;  %v736_v51 = vsel %vm662_vm3, %v2130_v58, 0.0  ;;  %4309 = vst [vmem:[#allocation3_spill] sm:$0xff] %v2148_v8 }
 0x119   :  { %v731_v5 = vadd.f32 %v730_v59, %v729_v56  ;;  %v738_v59 = vsel %vm662_vm3, %v2134_v29, 0.0 }
 0x11b   :  { %v733_v18 = vadd.f32 %v732_v11, %v731_v5  ;;  %v740_v11 = vsel %vm662_vm3, %v2140_v16, 0.0 }
 0x11d   :  { %v735_v38 = vadd.f32 %v734_v36, %v733_v18  ;;  %v613_v36 = vpop.f32.mrf.mxu1 }
 0x11f   :  { %v737_v56 = vadd.f32 %v736_v51, %v735_v38  ;;  %v2158_v38 = vadd.f32 %v2000_v50, %v1906_v40  ;;  %v742_v51 = vsel %vm662_vm3, %v2148_v8, 0.0  ;;  %v1688_v25 = vpop.f32.mrf.mxu1  ;;  %v2172_v50 = vadd.f32 %v1906_v40, %v2057_v60 }
 0x120   :  { %v2187_v60 = vadd.f32 %v2072_v21, %v1906_v40 }
 0x121   :  { %v739_v5 = vadd.f32 %v738_v59, %v737_v56  ;;  %4310 = vst [vmem:[#allocation4_spill] sm:$0xff] %v2158_v38  ;;  %v744_v56 = vsel %vm662_vm3, %v2154_v26, 0.0  ;;  %4311 = vst [vmem:[#allocation5_spill] sm:$0xff] %v2172_v50  ;;  %v616_v8 = vpop.f32.mrf.mxu1 }
 0x122   :  { %4313 = vst [vmem:[#allocation7_spill] sm:$0xff] %v2187_v60 }
 0x123   :  { %v741_v18 = vadd.f32 %v740_v11, %v739_v5  ;;  %v746_v5 = vsel %vm662_vm3, %v2158_v38, 0.0 }
 0x125   :  { %v743_v29 = vadd.f32 %v742_v51, %v741_v18  ;;  %v748_v18 = vsel %vm662_vm3, %v2164_v61, 0.0  ;;  %v2177_v51 = vadd.f32 %v1906_v40, %v584_v39  ;;  %v1691_v39 = vpop.f32.mrf.mxu1 }
 0x127   :  { %v745_v59 = vadd.f32 %v744_v56, %v743_v29  ;;  %4312 = vst [vmem:[#allocation6_spill] sm:$0xff] %v2177_v51  ;;  %v2181_v29 = vadd.f32 %v2048_v43, %v1906_v40  ;;  %v750_v56 = vsel %vm662_vm3, %v2172_v50, 0.0  ;;  %v756_v50 = vsel %vm662_vm3, %v2187_v60, 0.0 }
 0x129   :  { %v747_v11 = vadd.f32 %v746_v5, %v745_v59  ;;  %v752_v59 = vsel %vm662_vm3, %v2177_v51, 0.0  ;;  %v2203_v51 = vadd.f32 %v2094_v9, %v1906_v40 }
 0x12b   :  { %v749_v13 = vadd.f32 %v748_v18, %v747_v11  ;;  %v754_v11 = vsel %vm662_vm3, %v2181_v29, 0.0  ;;  %v2194_v18 = vadd.f32 %v1906_v40, %v597_v31  ;;  %4315 = vst [vmem:[#allocation9_spill] sm:$0xff] %v2203_v51  ;;  %v2208_v31 = vadd.f32 %v1684_v62, %v1906_v40 }
 0x12d   :  { %v751_v38 = vadd.f32 %v750_v56, %v749_v13  ;;  %4314 = vst [vmem:[#allocation8_spill] sm:$0xff] %v2194_v18  ;;  %v2199_v13 = vadd.f32 %v1906_v40, %v600_v20  ;;  %v629_v56 = vpop.f32.mrf.mxu1  ;;  %v762_v20 = vsel %vm662_vm3, %v2203_v51, 0.0  ;;  %v2228_v51 = vadd.f32 %v1688_v25, %v1906_v40 }
 0x12f   :  { %v753_v5 = vadd.f32 %v752_v59, %v751_v38  ;;  %v758_v38 = vsel %vm662_vm3, %v2194_v18, 0.0  ;;  %v1692_v60 = vpop.f32.mrf.mxu1  ;;  %v2223_v18 = vadd.f32 %v1687_v34, %v1906_v40  ;;  %4318 = vst [vmem:[#allocation12_spill] sm:$0xff] %v2228_v51 }
 0x131   :  { %v755_v43 = vadd.f32 %v754_v11, %v753_v5  ;;  %v760_v5 = vsel %vm662_vm3, %v2199_v13, 0.0  ;;  %4317 = vst [vmem:[#allocation11_spill] sm:$0xff] %v2223_v18 }
 0x133   :  { %v757_v21 = vadd.f32 %v756_v50, %v755_v43  ;;  %v2215_v50 = vadd.f32 %v1906_v40, %v613_v36  ;;  %v764_v43 = vsel %vm662_vm3, %v2208_v31, 0.0 }
 0x135   :  { %v759_v59 = vadd.f32 %v758_v38, %v757_v21  ;;  %4316 = vst [vmem:[#allocation10_spill] sm:$0xff] %v2215_v50  ;;  %v2220_v21 = vadd.f32 %v1906_v40, %v616_v8  ;;  %v632_v38 = vpop.f32.mrf.mxu1  ;;  %v770_v8 = vsel %vm662_vm3, %v2223_v18, 0.0  ;;  %v2248_v18 = vadd.f32 %v1692_v60, %v1906_v40 }
 0x137   :  { %v761_v11 = vadd.f32 %v760_v5, %v759_v59  ;;  %v766_v59 = vsel %vm662_vm3, %v2215_v50, 0.0  ;;  %v768_v36 = vsel %vm662_vm3, %v2220_v21, 0.0  ;;  %v2243_v50 = vadd.f32 %v1691_v39, %v1906_v40  ;;  %4322 = vst [vmem:[#allocation16_spill] sm:$0xff] %v2248_v18 }
 0x138   :  { %v780_v39 = vsel %vm662_vm3, %v2248_v18, 0.0 }
 0x139   :  { %v763_v9 = vadd.f32 %v762_v20, %v761_v11  ;;  %v1695_v20 = vpop.f32.mrf.mxu1  ;;  %4321 = vst [vmem:[#allocation15_spill] sm:$0xff] %v2243_v50 }
 0x13b   :  { %v765_v62 = vadd.f32 %v764_v43, %v763_v9  ;;  %v2235_v9 = vadd.f32 %v1906_v40, %v629_v56  ;;  %v772_v43 = vsel %vm662_vm3, %v2228_v51, 0.0 }
 0x13d   :  { %v767_v5 = vadd.f32 %v766_v59, %v765_v62  ;;  %4319 = vst [vmem:[#allocation13_spill] sm:$0xff] %v2235_v9  ;;  %v2240_v62 = vadd.f32 %v1906_v40, %v632_v38  ;;  %v645_v59 = vpop.f32.mrf.mxu1  ;;  %v778_v38 = vsel %vm662_vm3, %v2243_v50, 0.0 }
 0x13f   :  { %v769_v11 = vadd.f32 %v768_v36, %v767_v5  ;;  %4320 = vst [vmem:[#allocation14_spill] sm:$0xff] %v2240_v62  ;;  %v774_v5 = vsel %vm662_vm3, %v2235_v9, 0.0  ;;  %v776_v56 = vsel %vm662_vm3, %v2240_v62, 0.0 }
 0x141   :  { %v771_v34 = vadd.f32 %v770_v8, %v769_v11  ;;  %v1696_v8 = vpop.f32.mrf.mxu1 }
 0x143   :  { %v773_v25 = vadd.f32 %v772_v43, %v771_v34  ;;  %v2257_v43 = vadd.f32 %v1906_v40, %v645_v59 }
 0x145   :  { %v775_v36 = vadd.f32 %v774_v5, %v773_v25  ;;  %4323 = vst [vmem:[#allocation17_spill] sm:$0xff] %v2257_v43  ;;  %v648_v25 = vpop.f32.mrf.mxu1  ;;  %v782_v60 = vsel %vm662_vm3, %v2257_v43, 0.0 }
 0x146   :  { %v2262_v5 = vadd.f32 %v1906_v40, %v648_v25 }
 0x147   :  { %v777_v11 = vadd.f32 %v776_v56, %v775_v36  ;;  %v2265_v56 = vadd.f32 %v1695_v20, %v1906_v40 }
 0x149   :  { %v779_v34 = vadd.f32 %v778_v38, %v777_v11  ;;  %v784_v11 = vsel %vm662_vm3, %v2262_v5, 0.0  ;;  %v786_v59 = vsel %vm662_vm3, %v2265_v56, 0.0 }
 0x14b   :  { %v781_v9 = vadd.f32 %v780_v39, %v779_v34  ;;  %v2272_v34 = vadd.f32 %v1696_v8, %v1906_v40 }
 0x14d   :  { %v783_v36 = vadd.f32 %v782_v60, %v781_v9  ;;  %v788_v43 = vsel %vm662_vm3, %v2272_v34, 0.0 }
 0x14f   :  { %v785_v38 = vadd.f32 %v784_v11, %v783_v36 }
 0x151   :  { %v787_v39 = vadd.f32 %v786_v59, %v785_v38 }
 0x153   :  { %v789_v25 = vadd.f32 %v788_v43, %v787_v39 }
 0x155   :  { %v790_v18 = vrot.slane %v789_v25, 4 }
 0x157   :  { %v791_v9 = vadd.f32 %v790_v18, %v789_v25 }
 0x159   :  { %v792_v60 = vrot.slane %v791_v9, 2 }
 0x15b   :  { %v793_v20 = vadd.f32 %v792_v60, %v791_v9 }
 0x15d   :  { %v794_v50 = vrot.slane %v793_v20, 1 }
 0x15f   :  { %v795_v62 = vadd.f32 %v794_v50, %v793_v20 }
 0x161   :  { %v2276_v51 = vmul.f32 0.001953125, %v795_v62 }
 0x163   :  { %v2280_v36 = vsub.f32 %v1909_v42, %v2276_v51  ;;  %v2284_v40 = vsub.f32 %v1915_v45, %v2276_v51  ;;  %v2288_v8 = vsub.f32 %v1912_v44, %v2276_v51  ;;  %v2292_v18 = vsub.f32 %v1922_v49, %v2276_v51 }
 0x164   :  { %v2300_v42 = vsub.f32 %v1931_v55, %v2276_v51  ;;  %v2306_v44 = vsub.f32 %v1945_v1, %v2276_v51  ;;  %v2314_v59 = vsub.f32 %v1940_v63, %v2276_v51  ;;  %v2321_v1 = vsub.f32 %v1948_v4, %v2276_v51 }
 0x165   :  { %v862_v50 = vmul.f32 %v2280_v36, %v2280_v36  ;;  %v863_v62 = vmul.f32 %v2284_v40, %v2284_v40  ;;  %v864_v45 = vmul.f32 %v2288_v8, %v2288_v8  ;;  %v865_v49 = vmul.f32 %v2292_v18, %v2292_v18 }
 0x166   :  { %v866_v55 = vmul.f32 %v2300_v42, %v2300_v42  ;;  %v867_v9 = vmul.f32 %v2306_v44, %v2306_v44  ;;  %v2328_v63 = vsub.f32 %v1957_v10, %v2276_v51  ;;  %v2335_v4 = vsub.f32 %v1969_v19, %v2276_v51 }
 0x167   :  { %v926_v43 = vsel %vm662_vm3, %v862_v50, 0.0  ;;  %v927_v11 = vsel %vm662_vm3, %v863_v62, 0.0  ;;  %v929_v39 = vsel %vm662_vm3, %v864_v45, 0.0  ;;  %v931_v60 = vsel %vm662_vm3, %v865_v49, 0.0 }
 0x168   :  { %v928_v38 = vadd.f32 %v927_v11, %v926_v43  ;;  %v868_v50 = vmul.f32 %v2314_v59, %v2314_v59  ;;  %v933_v62 = vsel %vm662_vm3, %v866_v55, 0.0  ;;  %v869_v43 = vmul.f32 %v2321_v1, %v2321_v1 }
 0x169   :  { %v935_v49 = vsel %vm662_vm3, %v867_v9, 0.0  ;;  %v2342_v10 = vsub.f32 %v1964_v17, %v2276_v51  ;;  %v2349_v19 = vsub.f32 %v1972_v22, %v2276_v51  ;;  %v2356_v17 = vsub.f32 %v1981_v28, %v2276_v51 }
 0x16a   :  { %v930_v25 = vadd.f32 %v929_v39, %v928_v38  ;;  %v870_v38 = vmul.f32 %v2328_v63, %v2328_v63  ;;  %v937_v55 = vsel %vm662_vm3, %v868_v50, 0.0  ;;  %v939_v9 = vsel %vm662_vm3, %v869_v43, 0.0 }
 0x16b   :  { %v2363_v22 = vsub.f32 %v1993_v37, %v2276_v51  ;;  %v2370_v28 = vsub.f32 %v1988_v35, %v2276_v51  ;;  %v2377_v37 = vsub.f32 %v1996_v41, %v2276_v51  ;;  %v2384_v35 = vsub.f32 %v2005_v52, %v2276_v51 }
 0x16c   :  { %v932_v20 = vadd.f32 %v931_v60, %v930_v25  ;;  %v871_v25 = vmul.f32 %v2335_v4, %v2335_v4  ;;  %v941_v50 = vsel %vm662_vm3, %v870_v38, 0.0  ;;  %v2391_v41 = vsub.f32 %v2017_v3, %v2276_v51 }
 0x16d   :  { %v2398_v52 = vsub.f32 %v2012_v0, %v2276_v51  ;;  %v2405_v3 = vsub.f32 %v2020_v7, %v2276_v51  ;;  %v2412_v0 = vsub.f32 %v2029_v15, %v2276_v51  ;;  %v2419_v7 = vsub.f32 %v2041_v30, %v2276_v51 }
 0x16e   :  { %v934_v45 = vadd.f32 %v933_v62, %v932_v20  ;;  %v872_v20 = vmul.f32 %v2342_v10, %v2342_v10  ;;  %v943_v43 = vsel %vm662_vm3, %v871_v25, 0.0  ;;  %v2426_v15 = vsub.f32 %v2036_v27, %v2276_v51 }
 0x16f   :  { %v2433_v30 = vsub.f32 %v2044_v33, %v2276_v51  ;;  %v2440_v27 = vsub.f32 %v2053_v48, %v2276_v51  ;;  %v2447_v33 = vsub.f32 %v2065_v6, %v2276_v51  ;;  %v2454_v48 = vsub.f32 %v2060_v2, %v2276_v51 }
 0x170   :  { %v936_v11 = vadd.f32 %v935_v49, %v934_v45  ;;  %v873_v45 = vmul.f32 %v2349_v19, %v2349_v19  ;;  %v945_v38 = vsel %vm662_vm3, %v872_v20, 0.0  ;;  %v2461_v6 = vsub.f32 %v2068_v12, %v2276_v51 }
 0x171   :  { %v2468_v2 = vsub.f32 %v2077_v24, %v2276_v51  ;;  %v2475_v12 = vsub.f32 %v2087_v54, %v2276_v51  ;;  %v2482_v24 = vsub.f32 %v2082_v46, %v2276_v51  ;;  %v2489_v54 = vsub.f32 %v2090_v57, %v2276_v51 }
 0x172   :  { %v938_v39 = vadd.f32 %v937_v55, %v936_v11  ;;  %v874_v11 = vmul.f32 %v2356_v17, %v2356_v17  ;;  %v947_v25 = vsel %vm662_vm3, %v873_v45, 0.0  ;;  %v2496_v46 = vsub.f32 %v2100_v14, %v2276_v51 }
 0x173   :  { %v2503_v57 = vsub.f32 %v2106_v23, %v2276_v51  ;;  %v2510_v14 = vsub.f32 %v2110_v32, %v2276_v51  ;;  %v2517_v23 = vsub.f32 %v2116_v53, %v2276_v51  ;;  %v2524_v32 = vsub.f32 %v2124_v47, %v2276_v51 }
 0x174   :  { %v940_v60 = vadd.f32 %v939_v9, %v938_v39  ;;  %v875_v39 = vmul.f32 %v2363_v22, %v2363_v22  ;;  %v949_v20 = vsel %vm662_vm3, %v874_v11, 0.0  ;;  %v2531_v53 = vsub.f32 %v2130_v58, %v2276_v51 }
 0x175   :  { %v2545_v58 = vsub.f32 %v2140_v16, %v2276_v51  ;;  %v2559_v16 = vsub.f32 %v2154_v26, %v2276_v51  ;;  %v2573_v26 = vsub.f32 %v2164_v61, %v2276_v51 }
 0x176   :  { %v942_v62 = vadd.f32 %v941_v50, %v940_v60  ;;  %v876_v60 = vmul.f32 %v2370_v28, %v2370_v28  ;;  %v951_v45 = vsel %vm662_vm3, %v875_v39, 0.0 }
 0x178   :  { %v944_v49 = vadd.f32 %v943_v43, %v942_v62  ;;  %v877_v62 = vmul.f32 %v2377_v37, %v2377_v37  ;;  %v953_v11 = vsel %vm662_vm3, %v876_v60, 0.0 }
 0x17a   :  { %v946_v55 = vadd.f32 %v945_v38, %v944_v49  ;;  %v878_v49 = vmul.f32 %v2384_v35, %v2384_v35  ;;  %v955_v39 = vsel %vm662_vm3, %v877_v62, 0.0 }
 0x17c   :  { %v948_v9 = vadd.f32 %v947_v25, %v946_v55  ;;  %v879_v55 = vmul.f32 %v2391_v41, %v2391_v41  ;;  %v957_v60 = vsel %vm662_vm3, %v878_v49, 0.0 }
 0x17e   :  { %v950_v50 = vadd.f32 %v949_v20, %v948_v9  ;;  %v880_v9 = vmul.f32 %v2398_v52, %v2398_v52  ;;  %v959_v62 = vsel %vm662_vm3, %v879_v55, 0.0 }
 0x180   :  { %v952_v43 = vadd.f32 %v951_v45, %v950_v50  ;;  %v881_v50 = vmul.f32 %v2405_v3, %v2405_v3  ;;  %v961_v49 = vsel %vm662_vm3, %v880_v9, 0.0 }
 0x182   :  { %v954_v38 = vadd.f32 %v953_v11, %v952_v43  ;;  %v882_v43 = vmul.f32 %v2412_v0, %v2412_v0  ;;  %v963_v55 = vsel %vm662_vm3, %v881_v50, 0.0 }
 0x184   :  { %v956_v25 = vadd.f32 %v955_v39, %v954_v38  ;;  %v883_v38 = vmul.f32 %v2419_v7, %v2419_v7  ;;  %v965_v9 = vsel %vm662_vm3, %v882_v43, 0.0 }
 0x186   :  { %v958_v20 = vadd.f32 %v957_v60, %v956_v25  ;;  %v884_v25 = vmul.f32 %v2426_v15, %v2426_v15  ;;  %v967_v50 = vsel %vm662_vm3, %v883_v38, 0.0 }
 0x188   :  { %v960_v45 = vadd.f32 %v959_v62, %v958_v20  ;;  %v885_v20 = vmul.f32 %v2433_v30, %v2433_v30  ;;  %v969_v43 = vsel %vm662_vm3, %v884_v25, 0.0 }
 0x18a   :  { %v962_v11 = vadd.f32 %v961_v49, %v960_v45  ;;  %v886_v45 = vmul.f32 %v2440_v27, %v2440_v27  ;;  %v971_v38 = vsel %vm662_vm3, %v885_v20, 0.0 }
 0x18c   :  { %v964_v39 = vadd.f32 %v963_v55, %v962_v11  ;;  %v887_v11 = vmul.f32 %v2447_v33, %v2447_v33  ;;  %v973_v25 = vsel %vm662_vm3, %v886_v45, 0.0 }
 0x18e   :  { %v966_v60 = vadd.f32 %v965_v9, %v964_v39  ;;  %v888_v39 = vmul.f32 %v2454_v48, %v2454_v48  ;;  %v975_v20 = vsel %vm662_vm3, %v887_v11, 0.0 }
 0x190   :  { %v968_v62 = vadd.f32 %v967_v50, %v966_v60  ;;  %v889_v60 = vmul.f32 %v2461_v6, %v2461_v6  ;;  %v977_v45 = vsel %vm662_vm3, %v888_v39, 0.0 }
 0x192   :  { %v970_v49 = vadd.f32 %v969_v43, %v968_v62  ;;  %v890_v62 = vmul.f32 %v2468_v2, %v2468_v2  ;;  %v979_v11 = vsel %vm662_vm3, %v889_v60, 0.0 }
 0x194   :  { %v972_v55 = vadd.f32 %v971_v38, %v970_v49  ;;  %v891_v49 = vmul.f32 %v2475_v12, %v2475_v12  ;;  %v981_v39 = vsel %vm662_vm3, %v890_v62, 0.0 }
 0x196   :  { %v974_v9 = vadd.f32 %v973_v25, %v972_v55  ;;  %v892_v55 = vmul.f32 %v2482_v24, %v2482_v24  ;;  %v983_v60 = vsel %vm662_vm3, %v891_v49, 0.0 }
 0x198   :  { %v976_v50 = vadd.f32 %v975_v20, %v974_v9  ;;  %v893_v9 = vmul.f32 %v2489_v54, %v2489_v54  ;;  %v985_v62 = vsel %vm662_vm3, %v892_v55, 0.0 }
 0x19a   :  { %v978_v43 = vadd.f32 %v977_v45, %v976_v50  ;;  %v894_v50 = vmul.f32 %v2496_v46, %v2496_v46  ;;  %v987_v49 = vsel %vm662_vm3, %v893_v9, 0.0 }
 0x19c   :  { %v980_v38 = vadd.f32 %v979_v11, %v978_v43  ;;  %v895_v43 = vmul.f32 %v2503_v57, %v2503_v57  ;;  %v989_v55 = vsel %vm662_vm3, %v894_v50, 0.0 }
 0x19e   :  { %v982_v25 = vadd.f32 %v981_v39, %v980_v38  ;;  %v896_v38 = vmul.f32 %v2510_v14, %v2510_v14  ;;  %v991_v9 = vsel %vm662_vm3, %v895_v43, 0.0 }
 0x1a0   :  { %v984_v20 = vadd.f32 %v983_v60, %v982_v25  ;;  %v897_v25 = vmul.f32 %v2517_v23, %v2517_v23  ;;  %v993_v50 = vsel %vm662_vm3, %v896_v38, 0.0 }
 0x1a2   :  { %v986_v45 = vadd.f32 %v985_v62, %v984_v20  ;;  %v4324_v20 = vld [vmem:[#allocation2_spill] sm:$0xff]  ;;  %v898_v62 = vmul.f32 %v2524_v32, %v2524_v32  ;;  %v995_v43 = vsel %vm662_vm3, %v897_v25, 0.0 }
 0x1a3   :  { %v2538_v47 = vsub.f32 %v4324_v20, %v2276_v51  ;;  %v901_v20 = vmul.f32 %v2545_v58, %v2545_v58 }
 0x1a4   :  { %v988_v11 = vadd.f32 %v987_v49, %v986_v45  ;;  %v899_v49 = vmul.f32 %v2531_v53, %v2531_v53  ;;  %v997_v38 = vsel %vm662_vm3, %v898_v62, 0.0 }
 0x1a6   :  { %v990_v39 = vadd.f32 %v989_v55, %v988_v11  ;;  %v4325_v55 = vld [vmem:[#allocation3_spill] sm:$0xff]  ;;  %v999_v25 = vsel %vm662_vm3, %v899_v49, 0.0  ;;  %v1003_v49 = vsel %vm662_vm3, %v901_v20, 0.0 }
 0x1a7   :  { %4327 = vst [vmem:[#allocation3_spill] sm:$0xff] %v2559_v16 }
 0x1a8   :  { %v992_v60 = vadd.f32 %v991_v9, %v990_v39  ;;  %v2552_v39 = vsub.f32 %v4325_v55, %v2276_v51  ;;  %v900_v9 = vmul.f32 %v2538_v47, %v2538_v47 }
 0x1aa   :  { %v994_v45 = vadd.f32 %v993_v50, %v992_v60  ;;  %4326 = vst [vmem:[#allocation2_spill] sm:$0xff] %v2552_v39  ;;  %v902_v55 = vmul.f32 %v2552_v39, %v2552_v39  ;;  %v1001_v62 = vsel %vm662_vm3, %v900_v9, 0.0 }
 0x1ac   :  { %v996_v11 = vadd.f32 %v995_v43, %v994_v45  ;;  %v4328_v45 = vld [vmem:[#allocation4_spill] sm:$0xff]  ;;  %v1005_v9 = vsel %vm662_vm3, %v902_v55, 0.0 }
 0x1ad   :  { %v2566_v43 = vsub.f32 %v4328_v45, %v2276_v51  ;;  %4329 = vst [vmem:[#allocation4_spill] sm:$0xff] %v2573_v26 }
 0x1ae   :  { %v998_v60 = vadd.f32 %v997_v38, %v996_v11  ;;  %v903_v38 = vmul.f32 %v2559_v16, %v2559_v16  ;;  %v905_v16 = vmul.f32 %v2573_v26, %v2573_v26 }
 0x1af   :  { %v904_v39 = vmul.f32 %v2566_v43, %v2566_v43 }
 0x1b0   :  { %v1000_v50 = vadd.f32 %v999_v25, %v998_v60  ;;  %v4330_v25 = vld [vmem:[#allocation5_spill] sm:$0xff]  ;;  %v1007_v20 = vsel %vm662_vm3, %v903_v38, 0.0  ;;  %v1011_v38 = vsel %vm662_vm3, %v905_v16, 0.0 }
 0x1b1   :  { %v2580_v45 = vsub.f32 %v4330_v25, %v2276_v51  ;;  %v1009_v55 = vsel %vm662_vm3, %v904_v39, 0.0 }
 0x1b2   :  { %v1002_v11 = vadd.f32 %v1001_v62, %v1000_v50  ;;  %v4332_v62 = vld [vmem:[#allocation6_spill] sm:$0xff] }
 0x1b3   :  { %4331 = vst [vmem:[#allocation5_spill] sm:$0xff] %v2580_v45  ;;  %v2587_v61 = vsub.f32 %v4332_v62, %v2276_v51  ;;  %v906_v25 = vmul.f32 %v2580_v45, %v2580_v45 }
 0x1b4   :  { %v1004_v60 = vadd.f32 %v1003_v49, %v1002_v11  ;;  %v2594_v49 = vsub.f32 %v2181_v29, %v2276_v51 }
 0x1b5   :  { %v907_v26 = vmul.f32 %v2587_v61, %v2587_v61  ;;  %v1013_v39 = vsel %vm662_vm3, %v906_v25, 0.0 }
 0x1b6   :  { %v1006_v50 = vadd.f32 %v1005_v9, %v1004_v60  ;;  %4333 = vst [vmem:[#allocation6_spill] sm:$0xff] %v2594_v49  ;;  %v4334_v9 = vld [vmem:[#allocation7_spill] sm:$0xff]  ;;  %v908_v45 = vmul.f32 %v2594_v49, %v2594_v49 }
 0x1b7   :  { %v2601_v62 = vsub.f32 %v4334_v9, %v2276_v51  ;;  %v1015_v16 = vsel %vm662_vm3, %v907_v26, 0.0 }
 0x1b8   :  { %v1008_v11 = vadd.f32 %v1007_v20, %v1006_v50  ;;  %v4335_v20 = vld [vmem:[#allocation8_spill] sm:$0xff]  ;;  %v1017_v25 = vsel %vm662_vm3, %v908_v45, 0.0 }
 0x1b9   :  { %v2608_v29 = vsub.f32 %v4335_v20, %v2276_v51  ;;  %v909_v9 = vmul.f32 %v2601_v62, %v2601_v62 }
 0x1ba   :  { %v1010_v60 = vadd.f32 %v1009_v55, %v1008_v11  ;;  %v2615_v55 = vsub.f32 %v2199_v13, %v2276_v51  ;;  %v2629_v13 = vsub.f32 %v2208_v31, %v2276_v51  ;;  %v2643_v31 = vsub.f32 %v2220_v21, %v2276_v51 }
 0x1bb   :  { %4336 = vst [vmem:[#allocation7_spill] sm:$0xff] %v2608_v29  ;;  %v910_v49 = vmul.f32 %v2608_v29, %v2608_v29  ;;  %v1019_v26 = vsel %vm662_vm3, %v909_v9, 0.0 }
 0x1bc   :  { %v1012_v50 = vadd.f32 %v1011_v38, %v1010_v60  ;;  %v4337_v38 = vld [vmem:[#allocation9_spill] sm:$0xff]  ;;  %4342 = vst [vmem:[#allocation18_spill] sm:$0xff] %v2643_v31 }
 0x1bd   :  { %v2622_v20 = vsub.f32 %v4337_v38, %v2276_v51  ;;  %4339 = vst [vmem:[#allocation9_spill] sm:$0xff] %v2629_v13  ;;  %v1021_v45 = vsel %vm662_vm3, %v910_v49, 0.0 }
 0x1be   :  { %v1014_v11 = vadd.f32 %v1013_v39, %v1012_v50  ;;  %v911_v39 = vmul.f32 %v2615_v55, %v2615_v55 }
 0x1bf   :  { %4338 = vst [vmem:[#allocation8_spill] sm:$0xff] %v2622_v20  ;;  %v912_v29 = vmul.f32 %v2622_v20, %v2622_v20 }
 0x1c0   :  { %v1016_v60 = vadd.f32 %v1015_v16, %v1014_v11  ;;  %v4340_v16 = vld [vmem:[#allocation10_spill] sm:$0xff]  ;;  %v1023_v9 = vsel %vm662_vm3, %v911_v39, 0.0 }
 0x1c1   :  { %v2636_v38 = vsub.f32 %v4340_v16, %v2276_v51  ;;  %v1025_v49 = vsel %vm662_vm3, %v912_v29, 0.0 }
 0x1c2   :  { %v1018_v50 = vadd.f32 %v1017_v25, %v1016_v60  ;;  %v913_v25 = vmul.f32 %v2629_v13, %v2629_v13  ;;  %v915_v13 = vmul.f32 %v2643_v31, %v2643_v31 }
 0x1c3   :  { %4341 = vst [vmem:[#allocation10_spill] sm:$0xff] %v2636_v38  ;;  %v914_v20 = vmul.f32 %v2636_v38, %v2636_v38 }
 0x1c4   :  { %v1020_v11 = vadd.f32 %v1019_v26, %v1018_v50  ;;  %v4343_v26 = vld [vmem:[#allocation11_spill] sm:$0xff]  ;;  %v1027_v39 = vsel %vm662_vm3, %v913_v25, 0.0  ;;  %v1031_v25 = vsel %vm662_vm3, %v915_v13, 0.0 }
 0x1c5   :  { %v2650_v16 = vsub.f32 %v4343_v26, %v2276_v51  ;;  %v1029_v29 = vsel %vm662_vm3, %v914_v20, 0.0 }
 0x1c6   :  { %v1022_v60 = vadd.f32 %v1021_v45, %v1020_v11  ;;  %v4345_v45 = vld [vmem:[#allocation12_spill] sm:$0xff] }
 0x1c7   :  { %4344 = vst [vmem:[#allocation11_spill] sm:$0xff] %v2650_v16  ;;  %v2657_v21 = vsub.f32 %v4345_v45, %v2276_v51  ;;  %v916_v38 = vmul.f32 %v2650_v16, %v2650_v16 }
 0x1c8   :  { %v1024_v50 = vadd.f32 %v1023_v9, %v1022_v60  ;;  %v4347_v9 = vld [vmem:[#allocation13_spill] sm:$0xff] }
 0x1c9   :  { %4346 = vst [vmem:[#allocation12_spill] sm:$0xff] %v2657_v21  ;;  %v2664_v26 = vsub.f32 %v4347_v9, %v2276_v51  ;;  %v917_v31 = vmul.f32 %v2657_v21, %v2657_v21  ;;  %v1033_v20 = vsel %vm662_vm3, %v916_v38, 0.0 }
 0x1ca   :  { %v1026_v11 = vadd.f32 %v1025_v49, %v1024_v50  ;;  %v4349_v49 = vld [vmem:[#allocation14_spill] sm:$0xff] }
 0x1cb   :  { %4348 = vst [vmem:[#allocation13_spill] sm:$0xff] %v2664_v26  ;;  %v2671_v45 = vsub.f32 %v4349_v49, %v2276_v51  ;;  %v918_v16 = vmul.f32 %v2664_v26, %v2664_v26  ;;  %v1035_v13 = vsel %vm662_vm3, %v917_v31, 0.0 }
 0x1cc   :  { %v1028_v60 = vadd.f32 %v1027_v39, %v1026_v11  ;;  %v4351_v39 = vld [vmem:[#allocation15_spill] sm:$0xff] }
 0x1cd   :  { %4350 = vst [vmem:[#allocation14_spill] sm:$0xff] %v2671_v45  ;;  %v2678_v9 = vsub.f32 %v4351_v39, %v2276_v51  ;;  %v919_v21 = vmul.f32 %v2671_v45, %v2671_v45  ;;  %v1037_v38 = vsel %vm662_vm3, %v918_v16, 0.0 }
 0x1ce   :  { %v1030_v50 = vadd.f32 %v1029_v29, %v1028_v60  ;;  %v4353_v29 = vld [vmem:[#allocation16_spill] sm:$0xff] }
 0x1cf   :  { %4352 = vst [vmem:[#allocation15_spill] sm:$0xff] %v2678_v9  ;;  %v2685_v49 = vsub.f32 %v4353_v29, %v2276_v51  ;;  %v920_v26 = vmul.f32 %v2678_v9, %v2678_v9  ;;  %v1039_v31 = vsel %vm662_vm3, %v919_v21, 0.0 }
 0x1d0   :  { %v1032_v11 = vadd.f32 %v1031_v25, %v1030_v50  ;;  %v4355_v25 = vld [vmem:[#allocation17_spill] sm:$0xff] }
 0x1d1   :  { %4354 = vst [vmem:[#allocation16_spill] sm:$0xff] %v2685_v49  ;;  %v2692_v39 = vsub.f32 %v4355_v25, %v2276_v51  ;;  %v921_v29 = vmul.f32 %v2685_v49, %v2685_v49  ;;  %v1041_v16 = vsel %vm662_vm3, %v920_v26, 0.0 }
 0x1d2   :  { %v1034_v60 = vadd.f32 %v1033_v20, %v1032_v11  ;;  %v2699_v20 = vsub.f32 %v2262_v5, %v2276_v51  ;;  %v2713_v5 = vsub.f32 %v2272_v34, %v2276_v51 }
 0x1d3   :  { %4356 = vst [vmem:[#allocation17_spill] sm:$0xff] %v2692_v39  ;;  %v922_v25 = vmul.f32 %v2692_v39, %v2692_v39  ;;  %v1043_v21 = vsel %vm662_vm3, %v921_v29, 0.0 }
 0x1d4   :  { %v1036_v50 = vadd.f32 %v1035_v13, %v1034_v60  ;;  %4357 = vst [vmem:[#allocation19_spill] sm:$0xff] %v2699_v20  ;;  %v2706_v13 = vsub.f32 %v2265_v56, %v2276_v51  ;;  %v925_v26 = vmul.f32 %v2713_v5, %v2713_v5 }
 0x1d6   :  { %v1038_v11 = vadd.f32 %v1037_v38, %v1036_v50  ;;  %4358 = vst [vmem:[#allocation20_spill] sm:$0xff] %v2706_v13  ;;  %v923_v38 = vmul.f32 %v2699_v20, %v2699_v20  ;;  %v924_v56 = vmul.f32 %v2706_v13, %v2706_v13  ;;  %v1051_v20 = vsel %vm662_vm3, %v925_v26, 0.0  ;;  %v4362_v26 = vld [vmem:[#allocation5_spill] sm:$0xff] }
 0x1d8   :  { %v1040_v60 = vadd.f32 %v1039_v31, %v1038_v11  ;;  %v1045_v31 = vsel %vm662_vm3, %v922_v25, 0.0  ;;  %v1049_v51 = vsel %vm662_vm3, %v924_v56, 0.0  ;;  %v4361_v56 = vld [vmem:[#allocation4_spill] sm:$0xff] }
 0x1da   :  { %v1042_v50 = vadd.f32 %v1041_v16, %v1040_v60  ;;  %v1047_v60 = vsel %vm662_vm3, %v923_v38, 0.0 }
 0x1dc   :  { %v1044_v11 = vadd.f32 %v1043_v21, %v1042_v50 }
 0x1de   :  { %v1046_v49 = vadd.f32 %v1045_v31, %v1044_v11 }
 0x1e0   :  { %v1048_v16 = vadd.f32 %v1047_v60, %v1046_v49 }
 0x1e2   :  { %v1050_v34 = vadd.f32 %v1049_v51, %v1048_v16  ;;  %v4363_v16 = vld [vmem:[#allocation6_spill] sm:$0xff] }
 0x1e4   :  { %v1052_v39 = vadd.f32 %v1051_v20, %v1050_v34  ;;  %v4359_v20 = vld [vmem:[#allocation2_spill] sm:$0xff]  ;;  %v4364_v34 = vld [vmem:[#allocation7_spill] sm:$0xff] }
 0x1e6   :  { %v1053_v29 = vrot.slane %v1052_v39, 4 }
 0x1e8   :  { %v1054_v50 = vadd.f32 %v1053_v29, %v1052_v39 }
 0x1ea   :  { %v1055_v21 = vrot.slane %v1054_v50, 2 }
 0x1ec   :  { %v1056_v9 = vadd.f32 %v1055_v21, %v1054_v50  ;;  %v4365_v21 = vld [vmem:[#allocation8_spill] sm:$0xff] }
 0x1ee   :  { %v1057_v13 = vrot.slane %v1056_v9, 1 }
 0x1f0   :  { %v1058_v45 = vadd.f32 %v1057_v13, %v1056_v9  ;;  %v4360_v13 = vld [vmem:[#allocation3_spill] sm:$0xff] }
 0x1f2   :  { %v1059_v25 = vmul.f32 0.001953125, %v1058_v45 }
 0x1f4   :  { %v1060_v11 = vadd.f32 1e-05, %v1059_v25  ;;  %v2935_v25 = vld [vmem:[%s4247_s3] ss:$0 sm:$0xff] }
 0x1f6   :  { %1736 = vrsqrt.f32 %v1060_v11  ;;  %v4367_v11 = vld [vmem:[#allocation9_spill] sm:$0xff] }
 0x203   :  { %v2726_v31 = vpop.eup %1736 }
 0x204   :  { %v2730_v49 = vmul.f32 %v2726_v31, %v2280_v36  ;;  %v2734_v38 = vmul.f32 %v2726_v31, %v2284_v40  ;;  %v2738_v39 = vmul.f32 %v2726_v31, %v2288_v8  ;;  %v2742_v9 = vmul.f32 %v2726_v31, %v2292_v18 }
 0x205   :  { %v2746_v45 = vmul.f32 %v2726_v31, %v2300_v42  ;;  %v2750_v36 = vmul.f32 %v2726_v31, %v2306_v44  ;;  %v2754_v40 = vmul.f32 %v2726_v31, %v2314_v59  ;;  %v2758_v8 = vmul.f32 %v2726_v31, %v2321_v1 }
 0x206   :  { %v2762_v18 = vmul.f32 %v2726_v31, %v2328_v63  ;;  %v2766_v42 = vmul.f32 %v2726_v31, %v2335_v4  ;;  %v2770_v44 = vmul.f32 %v2726_v31, %v2342_v10  ;;  %v2774_v59 = vmul.f32 %v2726_v31, %v2349_v19 }
 0x207   :  { %v2778_v1 = vmul.f32 %v2726_v31, %v2356_v17  ;;  %v2782_v63 = vmul.f32 %v2726_v31, %v2363_v22  ;;  %v2786_v4 = vmul.f32 %v2726_v31, %v2370_v28  ;;  %v2790_v10 = vmul.f32 %v2726_v31, %v2377_v37 }
 0x208   :  { %v2794_v19 = vmul.f32 %v2726_v31, %v2384_v35  ;;  %v2798_v17 = vmul.f32 %v2726_v31, %v2391_v41  ;;  %v2802_v22 = vmul.f32 %v2726_v31, %v2398_v52  ;;  %v2806_v28 = vmul.f32 %v2726_v31, %v2405_v3 }
 0x209   :  { %v2810_v37 = vmul.f32 %v2726_v31, %v2412_v0  ;;  %v2814_v35 = vmul.f32 %v2726_v31, %v2419_v7  ;;  %v2818_v41 = vmul.f32 %v2726_v31, %v2426_v15  ;;  %v2822_v52 = vmul.f32 %v2726_v31, %v2433_v30 }
 0x20a   :  { %v2826_v3 = vmul.f32 %v2726_v31, %v2440_v27  ;;  %v2830_v0 = vmul.f32 %v2726_v31, %v2447_v33  ;;  %v2834_v7 = vmul.f32 %v2726_v31, %v2454_v48  ;;  %v2838_v15 = vmul.f32 %v2726_v31, %v2461_v6 }
 0x20b   :  { %v2842_v30 = vmul.f32 %v2726_v31, %v2468_v2  ;;  %v2846_v27 = vmul.f32 %v2726_v31, %v2475_v12  ;;  %v2850_v33 = vmul.f32 %v2726_v31, %v2482_v24  ;;  %v2854_v48 = vmul.f32 %v2726_v31, %v2489_v54 }
 0x20c   :  { %v2858_v6 = vmul.f32 %v2726_v31, %v2496_v46  ;;  %v2862_v2 = vmul.f32 %v2726_v31, %v2503_v57  ;;  %v2866_v12 = vmul.f32 %v2726_v31, %v2510_v14  ;;  %v2870_v24 = vmul.f32 %v2726_v31, %v2517_v23 }
 0x20d   :  { %v2874_v54 = vmul.f32 %v2726_v31, %v2524_v32  ;;  %v2878_v46 = vmul.f32 %v2726_v31, %v2531_v53  ;;  %v2882_v57 = vmul.f32 %v2726_v31, %v2538_v47  ;;  %v2886_v14 = vmul.f32 %v2726_v31, %v2545_v58 }
 0x20e   :  { %v2890_v23 = vmul.f32 %v2726_v31, %v4359_v20  ;;  %v2894_v32 = vmul.f32 %v2726_v31, %v4360_v13  ;;  %v2898_v53 = vmul.f32 %v2726_v31, %v2566_v43  ;;  %v2902_v47 = vmul.f32 %v2726_v31, %v4361_v56  ;;  %v4369_v20 = vld [vmem:[#allocation10_spill] sm:$0xff] }
 0x20f   :  { %v2906_v58 = vmul.f32 %v2726_v31, %v4362_v26  ;;  %v2910_v60 = vmul.f32 %v2726_v31, %v2587_v61  ;;  %v2914_v51 = vmul.f32 %v2726_v31, %v4363_v16  ;;  %v2918_v43 = vmul.f32 %v2726_v31, %v2601_v62  ;;  %v4371_v56 = vld [vmem:[#allocation18_spill] sm:$0xff]  ;;  %v4373_v26 = vld [vmem:[#allocation11_spill] sm:$0xff] }
 0x210   :  { %v2922_v29 = vmul.f32 %v2726_v31, %v4364_v34  ;;  %v2926_v50 = vmul.f32 %v2726_v31, %v2615_v55  ;;  %v2930_v61 = vmul.f32 %v2726_v31, %v4365_v21  ;;  %v2939_v62 = vmul.f32 %v2726_v31, %v4367_v11  ;;  %v4375_v34 = vld [vmem:[#allocation12_spill] sm:$0xff] }
 0x211   :  { %v2943_v13 = vmul.f32 %v2726_v31, %v4369_v20  ;;  %v2947_v55 = vmul.f32 %v2726_v31, %v4371_v56  ;;  %v2951_v16 = vmul.f32 %v2726_v31, %v4373_v26  ;;  %v2955_v21 = vmul.f32 %v2726_v31, %v4375_v34 }
 0x212   :  { %4366 = vst [vmem:[#allocation2_spill] sm:$0xff] %v2930_v61  ;;  %4368 = vst [vmem:[#allocation3_spill] sm:$0xff] %v2939_v62  ;;  %v4377_v61 = vld [vmem:[#allocation13_spill] sm:$0xff]  ;;  %v4379_v62 = vld [vmem:[#allocation14_spill] sm:$0xff] }
 0x213   :  { %4370 = vst [vmem:[#allocation4_spill] sm:$0xff] %v2943_v13  ;;  %4372 = vst [vmem:[#allocation5_spill] sm:$0xff] %v2947_v55  ;;  %v2959_v11 = vmul.f32 %v2726_v31, %v4377_v61  ;;  %v2963_v20 = vmul.f32 %v2726_v31, %v4379_v62  ;;  %v4380_v13 = vld [vmem:[#allocation15_spill] sm:$0xff]  ;;  %v4381_v55 = vld [vmem:[#allocation16_spill] sm:$0xff] }
 0x214   :  { %4374 = vst [vmem:[#allocation6_spill] sm:$0xff] %v2951_v16  ;;  %4376 = vst [vmem:[#allocation7_spill] sm:$0xff] %v2955_v21  ;;  %v2967_v56 = vmul.f32 %v2726_v31, %v4380_v13  ;;  %v2971_v26 = vmul.f32 %v2726_v31, %v4381_v55  ;;  %v4382_v16 = vld [vmem:[#allocation17_spill] sm:$0xff]  ;;  %v4383_v21 = vld [vmem:[#allocation19_spill] sm:$0xff]  ;;  %v2987_v13 = vmul.f32 %v2726_v31, %v2713_v5 }
 0x215   :  { %4378 = vst [vmem:[#allocation8_spill] sm:$0xff] %v2959_v11  ;;  %v2975_v34 = vmul.f32 %v2726_v31, %v4382_v16  ;;  %v2979_v61 = vmul.f32 %v2726_v31, %v4383_v21  ;;  %v4384_v11 = vld [vmem:[#allocation20_spill] sm:$0xff]  ;;  %v2991_v55 = vmul.f32 %v2935_v25, %v2730_v49  ;;  %v2995_v16 = vmul.f32 %v2935_v25, %v2734_v38 }
 0x216   :  { %v2983_v62 = vmul.f32 %v2726_v31, %v4384_v11  ;;  %v2999_v21 = vmul.f32 %v2935_v25, %v2738_v39  ;;  %v3003_v11 = vmul.f32 %v2935_v25, %v2742_v9  ;;  %v3007_v5 = vmul.f32 %v2935_v25, %v2746_v45 }
 0x217   :  { %v3011_v31 = vmul.f32 %v2935_v25, %v2750_v36  ;;  %v3015_v49 = vmul.f32 %v2935_v25, %v2754_v40  ;;  %v3019_v38 = vmul.f32 %v2935_v25, %v2758_v8  ;;  %v3023_v39 = vmul.f32 %v2935_v25, %v2762_v18 }
 0x218   :  { %v3027_v9 = vmul.f32 %v2935_v25, %v2766_v42  ;;  %v3031_v45 = vmul.f32 %v2935_v25, %v2770_v44  ;;  %v3035_v36 = vmul.f32 %v2935_v25, %v2774_v59  ;;  %v3039_v40 = vmul.f32 %v2935_v25, %v2778_v1 }
 0x219   :  { %v3043_v8 = vmul.f32 %v2935_v25, %v2782_v63  ;;  %v3047_v18 = vmul.f32 %v2935_v25, %v2786_v4  ;;  %v3051_v42 = vmul.f32 %v2935_v25, %v2790_v10  ;;  %v3055_v44 = vmul.f32 %v2935_v25, %v2794_v19 }
 0x21a   :  { %v3059_v59 = vmul.f32 %v2935_v25, %v2798_v17  ;;  %v3063_v1 = vmul.f32 %v2935_v25, %v2802_v22  ;;  %v3067_v63 = vmul.f32 %v2935_v25, %v2806_v28  ;;  %v3071_v4 = vmul.f32 %v2935_v25, %v2810_v37 }
 0x21b   :  { %v3075_v10 = vmul.f32 %v2935_v25, %v2814_v35  ;;  %v3079_v19 = vmul.f32 %v2935_v25, %v2818_v41  ;;  %v3083_v17 = vmul.f32 %v2935_v25, %v2822_v52  ;;  %v3087_v22 = vmul.f32 %v2935_v25, %v2826_v3 }
 0x21c   :  { %v3091_v28 = vmul.f32 %v2935_v25, %v2830_v0  ;;  %v3095_v37 = vmul.f32 %v2935_v25, %v2834_v7  ;;  %v3099_v35 = vmul.f32 %v2935_v25, %v2838_v15  ;;  %v3103_v41 = vmul.f32 %v2935_v25, %v2842_v30 }
 0x21d   :  { %v3107_v52 = vmul.f32 %v2935_v25, %v2846_v27  ;;  %v3111_v3 = vmul.f32 %v2935_v25, %v2850_v33  ;;  %v3115_v0 = vmul.f32 %v2935_v25, %v2854_v48  ;;  %v3119_v7 = vmul.f32 %v2935_v25, %v2858_v6 }
 0x21e   :  { %v3123_v15 = vmul.f32 %v2935_v25, %v2862_v2  ;;  %v3127_v30 = vmul.f32 %v2935_v25, %v2866_v12  ;;  %v3131_v27 = vmul.f32 %v2935_v25, %v2870_v24  ;;  %v3135_v33 = vmul.f32 %v2935_v25, %v2874_v54 }
 0x21f   :  { %v3139_v48 = vmul.f32 %v2935_v25, %v2878_v46  ;;  %v3143_v6 = vmul.f32 %v2935_v25, %v2882_v57  ;;  %v3147_v2 = vmul.f32 %v2935_v25, %v2886_v14  ;;  %v3151_v12 = vmul.f32 %v2935_v25, %v2890_v23 }
 0x220   :  { %v3155_v24 = vmul.f32 %v2935_v25, %v2894_v32  ;;  %v3159_v54 = vmul.f32 %v2935_v25, %v2898_v53  ;;  %v3163_v46 = vmul.f32 %v2935_v25, %v2902_v47  ;;  %v3167_v57 = vmul.f32 %v2935_v25, %v2906_v58  ;;  %v4391_v58 = vld [vmem:[#allocation2_spill] sm:$0xff] }
 0x221   :  { %v3171_v14 = vmul.f32 %v2935_v25, %v2910_v60  ;;  %v3175_v23 = vmul.f32 %v2935_v25, %v2914_v51  ;;  %v3179_v32 = vmul.f32 %v2935_v25, %v2918_v43  ;;  %v3183_v53 = vmul.f32 %v2935_v25, %v2922_v29  ;;  %v3196_v51 = vld [vmem:[%s4248_s4] ss:$0 sm:$0xff] }
 0x222   :  { %4385 = vst [vmem:[#allocation9_spill] sm:$0xff] %v3167_v57  ;;  %v3187_v47 = vmul.f32 %v2935_v25, %v2926_v50  ;;  %v3191_v60 = vmul.f32 %v2935_v25, %v4391_v58  ;;  %v4398_v57 = vld [vmem:[#allocation8_spill] sm:$0xff] }
 0x223   :  { %4386 = vst [vmem:[#allocation10_spill] sm:$0xff] %v3171_v14  ;;  %4387 = vst [vmem:[#allocation18_spill] sm:$0xff] %v3175_v23  ;;  %v4393_v23 = vld [vmem:[#allocation3_spill] sm:$0xff] }
 0x224   :  { %4388 = vst [vmem:[#allocation11_spill] sm:$0xff] %v3179_v32  ;;  %4389 = vst [vmem:[#allocation12_spill] sm:$0xff] %v3183_v53  ;;  %v3200_v43 = vmul.f32 %v2935_v25, %v4393_v23  ;;  %v4394_v32 = vld [vmem:[#allocation4_spill] sm:$0xff]  ;;  %v4395_v53 = vld [vmem:[#allocation5_spill] sm:$0xff]  ;;  %v3220_v23 = vmul.f32 %v2935_v25, %v4398_v57  ;;  %v3240_v57 = vmul.f32 %v2935_v25, %v2979_v61 }
 0x225   :  { %4390 = vst [vmem:[#allocation13_spill] sm:$0xff] %v3187_v47  ;;  %4392 = vst [vmem:[#allocation14_spill] sm:$0xff] %v3191_v60  ;;  %v3204_v29 = vmul.f32 %v2935_v25, %v4394_v32  ;;  %v3208_v50 = vmul.f32 %v2935_v25, %v4395_v53  ;;  %v4396_v47 = vld [vmem:[#allocation6_spill] sm:$0xff]  ;;  %v4397_v60 = vld [vmem:[#allocation7_spill] sm:$0xff]  ;;  %v3224_v32 = vmul.f32 %v2935_v25, %v2963_v20 }
 0x226   :  { %v3212_v58 = vmul.f32 %v2935_v25, %v4396_v47  ;;  %v3216_v14 = vmul.f32 %v2935_v25, %v4397_v60  ;;  %v3228_v53 = vmul.f32 %v2935_v25, %v2967_v56  ;;  %v3232_v47 = vmul.f32 %v2935_v25, %v2971_v26 }
 0x227   :  { %v3236_v60 = vmul.f32 %v2935_v25, %v2975_v34  ;;  %v3244_v20 = vmul.f32 %v2935_v25, %v2983_v62  ;;  %v3248_v56 = vmul.f32 %v2935_v25, %v2987_v13  ;;  %v3252_v26 = vadd.f32 %v3196_v51, %v2991_v55 }
 0x228   :  { %v3256_v34 = vadd.f32 %v3196_v51, %v2995_v16  ;;  %v3260_v61 = vadd.f32 %v3196_v51, %v2999_v21  ;;  %v3264_v62 = vadd.f32 %v3196_v51, %v3003_v11  ;;  %v3268_v25 = vadd.f32 %v3196_v51, %v3007_v5 }
 0x229   :  { %v3272_v13 = vadd.f32 %v3196_v51, %v3011_v31  ;;  %v3276_v55 = vadd.f32 %v3196_v51, %v3015_v49  ;;  %v3280_v16 = vadd.f32 %v3196_v51, %v3019_v38  ;;  %v3284_v21 = vadd.f32 %v3196_v51, %v3023_v39 }
 0x22a   :  { %v3288_v11 = vadd.f32 %v3196_v51, %v3027_v9  ;;  %v3292_v5 = vadd.f32 %v3196_v51, %v3031_v45  ;;  %v3296_v31 = vadd.f32 %v3196_v51, %v3035_v36  ;;  %v3300_v49 = vadd.f32 %v3196_v51, %v3039_v40 }
 0x22b   :  { %v3304_v38 = vadd.f32 %v3196_v51, %v3043_v8  ;;  %v3308_v39 = vadd.f32 %v3196_v51, %v3047_v18  ;;  %v3312_v9 = vadd.f32 %v3196_v51, %v3051_v42  ;;  %v3316_v45 = vadd.f32 %v3196_v51, %v3055_v44 }
 0x22c   :  { %v3320_v36 = vadd.f32 %v3196_v51, %v3059_v59  ;;  %v3324_v40 = vadd.f32 %v3196_v51, %v3063_v1  ;;  %v3328_v8 = vadd.f32 %v3196_v51, %v3067_v63  ;;  %v3332_v18 = vadd.f32 %v3196_v51, %v3071_v4 }
 0x22d   :  { %v3336_v42 = vadd.f32 %v3196_v51, %v3075_v10  ;;  %v3340_v44 = vadd.f32 %v3196_v51, %v3079_v19  ;;  %v3344_v59 = vadd.f32 %v3196_v51, %v3083_v17  ;;  %v3348_v1 = vadd.f32 %v3196_v51, %v3087_v22 }
 0x22e   :  { %v3352_v63 = vadd.f32 %v3196_v51, %v3091_v28  ;;  %v3356_v4 = vadd.f32 %v3196_v51, %v3095_v37  ;;  %v3360_v10 = vadd.f32 %v3196_v51, %v3099_v35  ;;  %v3364_v19 = vadd.f32 %v3196_v51, %v3103_v41 }
 0x22f   :  { %v3368_v17 = vadd.f32 %v3196_v51, %v3107_v52  ;;  %v3372_v22 = vadd.f32 %v3196_v51, %v3111_v3  ;;  %v3376_v28 = vadd.f32 %v3196_v51, %v3115_v0  ;;  %v3380_v37 = vadd.f32 %v3196_v51, %v3119_v7 }
 0x230   :  { %v3384_v35 = vadd.f32 %v3196_v51, %v3123_v15  ;;  %v3388_v41 = vadd.f32 %v3196_v51, %v3127_v30  ;;  %v3392_v52 = vadd.f32 %v3196_v51, %v3131_v27  ;;  %v3396_v3 = vadd.f32 %v3196_v51, %v3135_v33 }
 0x231   :  { %v3400_v0 = vadd.f32 %v3196_v51, %v3139_v48  ;;  %v3404_v7 = vadd.f32 %v3196_v51, %v3143_v6  ;;  %v3408_v15 = vadd.f32 %v3196_v51, %v3147_v2  ;;  %v3412_v30 = vadd.f32 %v3196_v51, %v3151_v12  ;;  %v4404_v6 = vld [vmem:[#allocation9_spill] sm:$0xff] }
 0x232   :  { %v3416_v27 = vadd.f32 %v3196_v51, %v3155_v24  ;;  %v3420_v33 = vadd.f32 %v3196_v51, %v3159_v54  ;;  %v3424_v48 = vadd.f32 %v3196_v51, %v3163_v46  ;;  %v3428_v2 = vadd.f32 %v3196_v51, %v4404_v6 }
 0x233   :  { %4399 = vst [vmem:[#allocation15_spill] sm:$0xff] %v3408_v15  ;;  %4400 = vst [vmem:[#allocation16_spill] sm:$0xff] %v3412_v30  ;;  %v4406_v15 = vld [vmem:[#allocation10_spill] sm:$0xff]  ;;  %vm1266_vm4 = vcmp.ge.f32.partialorder %v3252_v26, 0.0  ;;  %vm1267_vm5 = vcmp.ge.f32.partialorder %v3256_v34, 0.0  ;;  %vm1268_vm6 = vcmp.ge.f32.partialorder %v3260_v61, 0.0 }
 0x234   :  { %4401 = vst [vmem:[#allocation17_spill] sm:$0xff] %v3416_v27  ;;  %4402 = vst [vmem:[#allocation19_spill] sm:$0xff] %v3420_v33  ;;  %v3432_v12 = vadd.f32 %v3196_v51, %v4406_v15  ;;  %v4407_v30 = vld [vmem:[#allocation18_spill] sm:$0xff]  ;;  %v4408_v27 = vld [vmem:[#allocation11_spill] sm:$0xff]  ;;  %vm1269_vm7 = vcmp.ge.f32.partialorder %v3264_v62, 0.0  ;;  %vm1270_vm8 = vcmp.ge.f32.partialorder %v3268_v25, 0.0 }
 0x235   :  { %4403 = vst [vmem:[#allocation20_spill] sm:$0xff] %v3424_v48  ;;  %4405 = vst [vmem:[#allocation2_spill] sm:$0xff] %v3428_v2  ;;  %v3436_v24 = vadd.f32 %v3196_v51, %v4407_v30  ;;  %v3440_v54 = vadd.f32 %v3196_v51, %v4408_v27  ;;  %v4409_v33 = vld [vmem:[#allocation12_spill] sm:$0xff]  ;;  %v4410_v48 = vld [vmem:[#allocation13_spill] sm:$0xff]  ;;  %v3456_v30 = vadd.f32 %v3196_v51, %v3200_v43  ;;  %vm1271_vm9 = vcmp.ge.f32.partialorder %v3272_v13, 0.0 }
 0x236   :  { %v3444_v46 = vadd.f32 %v3196_v51, %v4409_v33  ;;  %v3448_v6 = vadd.f32 %v3196_v51, %v4410_v48  ;;  %v4412_v2 = vld [vmem:[#allocation14_spill] sm:$0xff]  ;;  %v3460_v27 = vadd.f32 %v3196_v51, %v3204_v29  ;;  %v3464_v33 = vadd.f32 %v3196_v51, %v3208_v50 }
 0x237   :  { %v3452_v15 = vadd.f32 %v3196_v51, %v4412_v2  ;;  %v3468_v48 = vadd.f32 %v3196_v51, %v3212_v58  ;;  %v3472_v2 = vadd.f32 %v3196_v51, %v3216_v14  ;;  %v3476_v43 = vadd.f32 %v3196_v51, %v3220_v23 }
 0x238   :  { %4411 = vst [vmem:[#allocation3_spill] sm:$0xff] %v3448_v6  ;;  %4413 = vst [vmem:[#allocation4_spill] sm:$0xff] %v3464_v33  ;;  %v3480_v29 = vadd.f32 %v3196_v51, %v3224_v32  ;;  %v3484_v50 = vadd.f32 %v3196_v51, %v3228_v53  ;;  %v3488_v58 = vadd.f32 %v3196_v51, %v3232_v47  ;;  %vm1272_vm10 = vcmp.ge.f32.partialorder %v3276_v55, 0.0 }
 0x239   :  { %4414 = vst [vmem:[#allocation5_spill] sm:$0xff] %v3468_v48  ;;  %4415 = vst [vmem:[#allocation6_spill] sm:$0xff] %v3472_v2  ;;  %v3492_v14 = vadd.f32 %v3196_v51, %v3236_v60  ;;  %v3496_v23 = vadd.f32 %v3196_v51, %v3240_v57  ;;  %vm1273_vm11 = vcmp.ge.f32.partialorder %v3280_v16, 0.0  ;;  %vm1274_vm12 = vcmp.ge.f32.partialorder %v3284_v21, 0.0 }
 0x23a   :  { %4416 = vst [vmem:[#allocation7_spill] sm:$0xff] %v3476_v43  ;;  %4417 = vst [vmem:[#allocation8_spill] sm:$0xff] %v3480_v29  ;;  %v3509_v32 = vadd.f32 %v3196_v51, %v3244_v20  ;;  %vm1275_vm13 = vcmp.ge.f32.partialorder %v3288_v11, 0.0  ;;  %v1330_v53 = vmul.f32 0.01, %v3252_v26  ;;  %v3517_v57 = vadd.f32 %v3196_v51, %v3248_v56 }
 0x23b   :  { %4418 = vst [vmem:[#allocation9_spill] sm:$0xff] %v3484_v50  ;;  %4419 = vst [vmem:[#allocation10_spill] sm:$0xff] %v3488_v58  ;;  %v1331_v47 = vmul.f32 0.01, %v3256_v34  ;;  %v1332_v60 = vmul.f32 0.01, %v3260_v61 }
 0x23c   :  { %4420 = vst [vmem:[#allocation18_spill] sm:$0xff] %v3492_v14  ;;  %4421 = vst [vmem:[#allocation11_spill] sm:$0xff] %v3496_v23  ;;  %vm1276_vm14 = vcmp.ge.f32.partialorder %v3292_v5, 0.0  ;;  %v1333_v23 = vmul.f32 0.01, %v3264_v62  ;;  %vm1277_vm15 = vcmp.ge.f32.partialorder %v3296_v31, 0.0  ;;  %v1394_v51 = vsel %vm1266_vm4, %v3252_v26, %v1330_v53 }
 0x23d   :  { %4422 = vst [vmem:[#allocation12_spill] sm:$0xff] %v3509_v32  ;;  %4423 = vst [vmem:[#allocation13_spill] sm:$0xff] %v3517_v57  ;;  %v1334_v14 = vmul.f32 0.01, %v3268_v25  ;;  %v1335_v20 = vmul.f32 0.01, %v3272_v13  ;;  %v1395_v43 = vsel %vm1267_vm5, %v3256_v34, %v1331_v47  ;;  %v1396_v34 = vsel %vm1268_vm6, %v3260_v61, %v1332_v60 }
 0x23e   :  { %v1336_v32 = vmul.f32 0.01, %v3276_v55  ;;  %v1337_v58 = vmul.f32 0.01, %v3280_v16  ;;  %v1338_v50 = vmul.f32 0.01, %v3284_v21  ;;  %v1397_v61 = vsel %vm1269_vm7, %v3264_v62, %v1333_v23 }
 0x23f   :  { %vm1278_vm0 = vcmp.ge.f32.partialorder %v3300_v49, 0.0  ;;  %v1339_v56 = vmul.f32 0.01, %v3288_v11  ;;  %v3533_v57 = vmul.f32 0.01, %v3292_v5  ;;  %1458 = vst.msk [vmem:[%s4249_s5] sm:$0xff] %vm662_vm3, %v1394_v51  ;;  %v1398_v62 = vsel %vm1270_vm8, %v3268_v25, %v1334_v14 }
 0x240   :  { %v3536_v29 = vmul.f32 0.01, %v3296_v31  ;;  %vm1279_vm1 = vcmp.ge.f32.partialorder %v3304_v38, 0.0  ;;  %v3547_v26 = vmul.f32 0.01, %v3300_v49  ;;  %1459 = vst.msk [vmem:[%s4249_s5 + $0x8] sm:$0xff] %vm662_vm3, %v1395_v43  ;;  %v1399_v25 = vsel %vm1271_vm9, %v3272_v13, %v1335_v20 }
 0x241   :  { %v3550_v53 = vmul.f32 0.01, %v3304_v38  ;;  %v3553_v2 = vmul.f32 0.01, %v3308_v39  ;;  %vm1280_vm2 = vcmp.ge.f32.partialorder %v3308_v39, 0.0  ;;  %1460 = vst.msk [vmem:[%s4249_s5 + $0x10] sm:$0xff] %vm662_vm3, %v1396_v34  ;;  %v1400_v13 = vsel %vm1272_vm10, %v3276_v55, %v1336_v32 }
 0x242   :  { %v3564_v47 = vmul.f32 0.01, %v3312_v9  ;;  %v3567_v51 = vmul.f32 0.01, %v3316_v45  ;;  %v3570_v48 = vmul.f32 0.01, %v3320_v36  ;;  %v1401_v55 = vsel %vm1273_vm11, %v3280_v16, %v1337_v58 }
 0x243   :  { %vm1281_vm4 = vcmp.ge.f32.partialorder %v3312_v9, 0.0  ;;  %v3581_v43 = vmul.f32 0.01, %v3324_v40  ;;  %v3584_v60 = vmul.f32 0.01, %v3328_v8  ;;  %1461 = vst.msk [vmem:[%s4249_s5 + $0x18] sm:$0xff] %vm662_vm3, %v1397_v61  ;;  %v1402_v16 = vsel %vm1274_vm12, %v3284_v21, %v1338_v50 }
 0x244   :  { %4424 = vst [vmem:[#allocation14_spill] sm:$0xff] %v3567_v51  ;;  %v3587_v51 = vmul.f32 0.01, %v3332_v18  ;;  %vm1282_vm5 = vcmp.ge.f32.partialorder %v3316_v45, 0.0  ;;  %v3598_v23 = vmul.f32 0.01, %v3336_v42  ;;  %v1403_v50 = vsel %vm1275_vm13, %v3288_v11, %v1339_v56 }
 0x245   :  { %4425 = vst [vmem:[#allocation21_spill] sm:$0xff] %v3584_v60  ;;  %v3601_v34 = vmul.f32 0.01, %v3340_v44  ;;  %v3604_v60 = vmul.f32 0.01, %v3344_v59  ;;  %1462 = vst.msk [vmem:[%s4249_s5 + $0x20] sm:$0xff] %vm662_vm3, %v1398_v62  ;;  %v1404_v56 = vsel %vm1276_vm14, %v3292_v5, %v3533_v57 }
 0x246   :  { %vm1283_vm6 = vcmp.ge.f32.partialorder %v3320_v36, 0.0  ;;  %v3615_v14 = vmul.f32 0.01, %v3348_v1  ;;  %v3618_v61 = vmul.f32 0.01, %v3352_v63  ;;  %1463 = vst.msk [vmem:[%s4249_s5 + $0x28] sm:$0xff] %vm662_vm3, %v1399_v25 }
 0x247   :  { %4426 = vst [vmem:[#allocation22_spill] sm:$0xff] %v3601_v34  ;;  %v3621_v34 = vmul.f32 0.01, %v3356_v4  ;;  %vm1284_vm7 = vcmp.ge.f32.partialorder %v3324_v40, 0.0  ;;  %v3632_v20 = vmul.f32 0.01, %v3360_v10 }
 0x248   :  { %4427 = vst [vmem:[#allocation23_spill] sm:$0xff] %v3618_v61  ;;  %v3635_v62 = vmul.f32 0.01, %v3364_v19  ;;  %v3638_v61 = vmul.f32 0.01, %v3368_v17  ;;  %1464 = vst.msk [vmem:[%s4249_s5 + $0x30] sm:$0xff] %vm662_vm3, %v1400_v13 }
 0x249   :  { %v3651_v32 = vmul.f32 0.01, %v3372_v22  ;;  %v3654_v25 = vmul.f32 0.01, %v3376_v28  ;;  %1465 = vst.msk [vmem:[%s4249_s5 + $0x38] sm:$0xff] %vm662_vm3, %v1401_v55  ;;  %vm1288_vm11 = vcmp.ge.f32.partialorder %v3340_v44, 0.0 }
 0x24a   :  { %4428 = vst [vmem:[#allocation24_spill] sm:$0xff] %v3638_v61  ;;  %v3657_v61 = vmul.f32 0.01, %v3380_v37  ;;  %v3671_v58 = vmul.f32 0.01, %v3384_v35  ;;  %1466 = vst.msk [vmem:[%s4249_s5 + $0x40] sm:$0xff] %vm662_vm3, %v1402_v16 }
 0x24b   :  { %v3674_v13 = vmul.f32 0.01, %v3388_v41  ;;  %v3677_v21 = vmul.f32 0.01, %v3392_v52  ;;  %vm1292_vm12 = vcmp.ge.f32.partialorder %v3356_v4, 0.0  ;;  %1467 = vst.msk [vmem:[%s4249_s5 + $0x48] sm:$0xff] %vm662_vm3, %v1403_v50  ;;  %v1405_v50 = vsel %vm1277_vm15, %v3296_v31, %v3536_v29 }
 0x24c   :  { %v3691_v55 = vmul.f32 0.01, %v3396_v3  ;;  %v3697_v11 = vmul.f32 0.01, %v3404_v7  ;;  %vm1296_vm13 = vcmp.ge.f32.partialorder %v3372_v22, 0.0  ;;  %v4434_v16 = vld [vmem:[#allocation15_spill] sm:$0xff] }
 0x24d   :  { %4429 = vst [vmem:[#allocation25_spill] sm:$0xff] %v3674_v13  ;;  %4430 = vst [vmem:[#allocation26_spill] sm:$0xff] %v3677_v21  ;;  %v3694_v21 = vmul.f32 0.01, %v3400_v0  ;;  %v4438_v5 = vld [vmem:[#allocation17_spill] sm:$0xff]  ;;  %vm1300_vm14 = vcmp.ge.f32.partialorder %v3388_v41, 0.0 }
 0x24e   :  { %4431 = vst [vmem:[#allocation27_spill] sm:$0xff] %v3691_v55  ;;  %4433 = vst [vmem:[#allocation29_spill] sm:$0xff] %v3697_v11  ;;  %v3712_v11 = vmul.f32 0.01, %v4434_v16  ;;  %v3718_v57 = vmul.f32 0.01, %v4438_v5 }
 0x24f   :  { %4432 = vst [vmem:[#allocation28_spill] sm:$0xff] %v3694_v21  ;;  %v4436_v21 = vld [vmem:[#allocation16_spill] sm:$0xff]  ;;  %1468 = vst.msk [vmem:[%s4249_s5 + $0x50] sm:$0xff] %vm662_vm3, %v1404_v56  ;;  %v4443_v31 = vld [vmem:[#allocation2_spill] sm:$0xff]  ;;  %v1406_v56 = vsel %vm1278_vm0, %v3300_v49, %v3547_v26  ;;  %vm1304_vm15 = vcmp.ge.f32.partialorder %v3404_v7, 0.0  ;;  %v1407_v26 = vsel %vm1279_vm1, %v3304_v38, %v3550_v53  ;;  %v1408_v53 = vsel %vm1280_vm2, %v3308_v39, %v3553_v2 }
 0x250   :  { %4435 = vst [vmem:[#allocation15_spill] sm:$0xff] %v3712_v11  ;;  %v3715_v55 = vmul.f32 0.01, %v4436_v21  ;;  %4439 = vst [vmem:[#allocation17_spill] sm:$0xff] %v3718_v57  ;;  %v4441_v11 = vld [vmem:[#allocation20_spill] sm:$0xff]  ;;  %vm1312_vm1 = vcmp.ge.f32.partialorder %v3436_v24, 0.0  ;;  %v1409_v2 = vsel %vm1281_vm4, %v3312_v9, %v3564_v47 }
 0x251   :  { %v3736_v13 = vmul.f32 0.01, %v4441_v11  ;;  %v3739_v29 = vmul.f32 0.01, %v4443_v31  ;;  %1469 = vst.msk [vmem:[%s4249_s5 + $0x58] sm:$0xff] %vm662_vm3, %v1405_v50  ;;  %1470 = vst.msk [vmem:[%s4249_s5 + $0x60] sm:$0xff] %vm662_vm3, %v1406_v56 }
 0x252   :  { %4437 = vst [vmem:[#allocation16_spill] sm:$0xff] %v3715_v55  ;;  %v4440_v55 = vld [vmem:[#allocation19_spill] sm:$0xff]  ;;  %v3760_v49 = vmul.f32 0.01, %v3440_v54  ;;  %v3775_v50 = vmul.f32 0.01, %v3444_v46 }
 0x253   :  { %v3733_v57 = vmul.f32 0.01, %v4440_v55  ;;  %4442 = vst [vmem:[#allocation19_spill] sm:$0xff] %v3736_v13  ;;  %4444 = vst [vmem:[#allocation20_spill] sm:$0xff] %v3739_v29  ;;  %v3754_v29 = vmul.f32 0.01, %v3432_v12 }
 0x254   :  { %v3757_v13 = vmul.f32 0.01, %v3436_v24  ;;  %4445 = vst [vmem:[#allocation2_spill] sm:$0xff] %v3760_v49  ;;  %vm1308_vm0 = vcmp.ge.f32.partialorder %v4440_v55, 0.0  ;;  %v3778_v49 = vmul.f32 0.01, %v3448_v6 }
 0x255   :  { %v3781_v38 = vmul.f32 0.01, %v3452_v15  ;;  %1471 = vst.msk [vmem:[%s4249_s5 + $0x68] sm:$0xff] %vm662_vm3, %v1407_v26  ;;  %v3796_v56 = vmul.f32 0.01, %v3456_v30  ;;  %1472 = vst.msk [vmem:[%s4249_s5 + $0x70] sm:$0xff] %vm662_vm3, %v1408_v53 }
 0x256   :  { %v3802_v39 = vmul.f32 0.01, %v3464_v33  ;;  %vm1316_vm2 = vcmp.ge.f32.partialorder %v3452_v15, 0.0  ;;  %v4450_v26 = vld [vmem:[#allocation5_spill] sm:$0xff]  ;;  %v4454_v9 = vld [vmem:[#allocation7_spill] sm:$0xff]  ;;  %v4456_v6 = vld [vmem:[#allocation14_spill] sm:$0xff] }
 0x257   :  { %4446 = vst [vmem:[#allocation30_spill] sm:$0xff] %v3781_v38  ;;  %4447 = vst [vmem:[#allocation31_spill] sm:$0xff] %v3796_v56  ;;  %v3799_v38 = vmul.f32 0.01, %v3460_v27  ;;  %v3823_v47 = vmul.f32 0.01, %v4454_v9  ;;  %v1410_v53 = vsel %vm1282_vm5, %v3316_v45, %v4456_v6 }
 0x258   :  { %4449 = vst [vmem:[#allocation33_spill] sm:$0xff] %v3802_v39  ;;  %v3817_v39 = vmul.f32 0.01, %v4450_v26  ;;  %1473 = vst.msk [vmem:[%s4249_s5 + $0x78] sm:$0xff] %vm662_vm3, %v1409_v2  ;;  %vm1320_vm4 = vcmp.ge.f32.partialorder %v4450_v26, 0.0  ;;  %v4461_v45 = vld [vmem:[#allocation10_spill] sm:$0xff]  ;;  %v1411_v2 = vsel %vm1283_vm6, %v3320_v36, %v3570_v48 }
 0x259   :  { %4448 = vst [vmem:[#allocation32_spill] sm:$0xff] %v3799_v38  ;;  %v4452_v38 = vld [vmem:[#allocation6_spill] sm:$0xff]  ;;  %4455 = vst [vmem:[#allocation7_spill] sm:$0xff] %v3823_v47  ;;  %v3844_v6 = vmul.f32 0.01, %v4461_v45  ;;  %v4466_v36 = vld [vmem:[#allocation12_spill] sm:$0xff] }
 0x25a   :  { %4451 = vst [vmem:[#allocation5_spill] sm:$0xff] %v3817_v39  ;;  %v3820_v56 = vmul.f32 0.01, %v4452_v38  ;;  %v4459_v39 = vld [vmem:[#allocation9_spill] sm:$0xff]  ;;  %1474 = vst.msk [vmem:[%s4249_s5 + $0x80] sm:$0xff] %vm662_vm3, %v1410_v53  ;;  %v1412_v53 = vsel %vm1284_vm7, %v3324_v40, %v3581_v43  ;;  %vm1328_vm6 = vcmp.ge.f32.partialorder %v4466_v36, 0.0 }
 0x25b   :  { %v3841_v33 = vmul.f32 0.01, %v4459_v39  ;;  %4462 = vst [vmem:[#allocation10_spill] sm:$0xff] %v3844_v6  ;;  %vm1324_vm5 = vcmp.ge.f32.partialorder %v4459_v39, 0.0  ;;  %v3865_v48 = vmul.f32 0.01, %v4466_v36 }
 0x25c   :  { %4453 = vst [vmem:[#allocation6_spill] sm:$0xff] %v3820_v56  ;;  %v4457_v56 = vld [vmem:[#allocation8_spill] sm:$0xff]  ;;  %1475 = vst.msk [vmem:[%s4249_s5 + $0x88] sm:$0xff] %vm662_vm3, %v1411_v2  ;;  %vm4470_vm9 = vcmp.ge.f32.partialorder %v3328_v8, 0.0  ;;  %vm4471_vm7 = vcmp.ge.f32.partialorder %v3332_v18, 0.0  ;;  %vm4472_vm8 = vcmp.ge.f32.partialorder %v3336_v42, 0.0 }
 0x25d   :  { %v3838_v47 = vmul.f32 0.01, %v4457_v56  ;;  %4460 = vst [vmem:[#allocation9_spill] sm:$0xff] %v3841_v33  ;;  %v4463_v56 = vld [vmem:[#allocation18_spill] sm:$0xff]  ;;  %v4464_v33 = vld [vmem:[#allocation11_spill] sm:$0xff]  ;;  %4467 = vst [vmem:[#allocation12_spill] sm:$0xff] %v3865_v48  ;;  %v1414_v40 = vsel %vm4471_vm7, %v3332_v18, %v3587_v51  ;;  %v1415_v43 = vsel %vm4472_vm8, %v3336_v42, %v3598_v23 }
 0x25e   :  { %v3859_v6 = vmul.f32 0.01, %v4463_v56  ;;  %v4468_v56 = vld [vmem:[#allocation13_spill] sm:$0xff]  ;;  %1476 = vst.msk [vmem:[%s4249_s5 + $0x90] sm:$0xff] %vm662_vm3, %v1412_v53  ;;  %v4473_v2 = vld [vmem:[#allocation22_spill] sm:$0xff]  ;;  %vm4475_vm7 = vcmp.ge.f32.partialorder %v3348_v1, 0.0 }
 0x25f   :  { %4458 = vst [vmem:[#allocation14_spill] sm:$0xff] %v3838_v47  ;;  %v3862_v47 = vmul.f32 0.01, %v4464_v33  ;;  %vm1329_vm10 = vcmp.ge.f32.partialorder %v4468_v56, 0.0  ;;  %v3878_v33 = vmul.f32 0.01, %v4468_v56  ;;  %v1418_v42 = vsel %vm4475_vm7, %v3348_v1, %v3615_v14 }
 0x260   :  { %v4476_v51 = vld [vmem:[#allocation23_spill] sm:$0xff]  ;;  %vm4477_vm8 = vcmp.ge.f32.partialorder %v3352_v63, 0.0  ;;  %1478 = vst.msk [vmem:[%s4249_s5 + $0xa0] sm:$0xff] %vm662_vm3, %v1414_v40  ;;  %1479 = vst.msk [vmem:[%s4249_s5 + $0xa8] sm:$0xff] %vm662_vm3, %v1415_v43  ;;  %vm4481_vm7 = vcmp.ge.f32.partialorder %v3368_v17, 0.0  ;;  %v4514_v53 = vld [vmem:[#allocation33_spill] sm:$0xff] }
 0x261   :  { %4465 = vst [vmem:[#allocation34_spill] sm:$0xff] %v3862_v47  ;;  %v4469_v47 = vld [vmem:[#allocation21_spill] sm:$0xff]  ;;  %v1419_v23 = vsel %vm4477_vm8, %v3352_v63, %v4476_v51  ;;  %v4480_v63 = vld [vmem:[#allocation24_spill] sm:$0xff]  ;;  %1482 = vst.msk [vmem:[%s4249_s5 + $0xc0] sm:$0xff] %vm662_vm3, %v1418_v42  ;;  %vm4483_vm8 = vcmp.ge.f32.partialorder %v3380_v37, 0.0 }
 0x262   :  { %v1413_v48 = vsel %vm4470_vm9, %v3328_v8, %v4469_v47  ;;  %v1416_v8 = vsel %vm1288_vm11, %v3340_v44, %v4473_v2  ;;  %vm4474_vm9 = vcmp.ge.f32.partialorder %v3344_v59, 0.0  ;;  %v1420_v44 = vsel %vm1292_vm12, %v3356_v4, %v3621_v34  ;;  %1483 = vst.msk [vmem:[%s4249_s5 + $0xc8] sm:$0xff] %vm662_vm3, %v1419_v23  ;;  %v4488_v34 = vld [vmem:[#allocation27_spill] sm:$0xff]  ;;  %v4515_v40 = vld [vmem:[#allocation4_spill] sm:$0xff] }
 0x263   :  { %v1417_v18 = vsel %vm4474_vm9, %v3344_v59, %v3604_v60  ;;  %1477 = vst.msk [vmem:[%s4249_s5 + $0x98] sm:$0xff] %vm662_vm3, %v1413_v48  ;;  %vm4478_vm11 = vcmp.ge.f32.partialorder %v3360_v10, 0.0  ;;  %vm4479_vm9 = vcmp.ge.f32.partialorder %v3364_v19, 0.0  ;;  %v1423_v60 = vsel %vm4481_vm7, %v3368_v17, %v4480_v63  ;;  %1480 = vst.msk [vmem:[%s4249_s5 + $0xb0] sm:$0xff] %vm662_vm3, %v1416_v8  ;;  %v4520_v8 = vld [vmem:[#allocation7_spill] sm:$0xff]  ;;  %v4523_v51 = vld [vmem:[#allocation8_spill] sm:$0xff] }
 0x264   :  { %v1421_v59 = vsel %vm4478_vm11, %v3360_v10, %v3632_v20  ;;  %v1422_v1 = vsel %vm4479_vm9, %v3364_v19, %v3635_v62  ;;  %1481 = vst.msk [vmem:[%s4249_s5 + $0xb8] sm:$0xff] %vm662_vm3, %v1417_v18  ;;  %v1424_v4 = vsel %vm1296_vm13, %v3372_v22, %v3651_v32  ;;  %vm4482_vm12 = vcmp.ge.f32.partialorder %v3376_v28, 0.0  ;;  %1484 = vst.msk [vmem:[%s4249_s5 + $0xd0] sm:$0xff] %vm662_vm3, %v1420_v44  ;;  %v4485_v22 = vld [vmem:[#allocation25_spill] sm:$0xff]  ;;  %v4495_v62 = vld [vmem:[#allocation16_spill] sm:$0xff] }
 0x265   :  { %v1425_v10 = vsel %vm4482_vm12, %v3376_v28, %v3654_v25  ;;  %v1426_v19 = vsel %vm4483_vm8, %v3380_v37, %v3657_v61  ;;  %vm4484_vm11 = vcmp.ge.f32.partialorder %v3384_v35, 0.0  ;;  %1485 = vst.msk [vmem:[%s4249_s5 + $0xd8] sm:$0xff] %vm662_vm3, %v1421_v59  ;;  %1486 = vst.msk [vmem:[%s4249_s5 + $0xe0] sm:$0xff] %vm662_vm3, %v1422_v1  ;;  %v1428_v28 = vsel %vm1300_vm14, %v3388_v41, %v4485_v22  ;;  %v4486_v37 = vld [vmem:[#allocation26_spill] sm:$0xff]  ;;  %v4490_v61 = vld [vmem:[#allocation28_spill] sm:$0xff] }
 0x266   :  { %v1427_v17 = vsel %vm4484_vm11, %v3384_v35, %v3671_v58  ;;  %1487 = vst.msk [vmem:[%s4249_s5 + $0xe8] sm:$0xff] %vm662_vm3, %v1423_v60  ;;  %vm4487_vm13 = vcmp.ge.f32.partialorder %v3392_v52, 0.0  ;;  %vm4489_vm9 = vcmp.ge.f32.partialorder %v3396_v3, 0.0  ;;  %vm4491_vm7 = vcmp.ge.f32.partialorder %v3400_v0, 0.0  ;;  %1488 = vst.msk [vmem:[%s4249_s5 + $0xf0] sm:$0xff] %vm662_vm3, %v1424_v4  ;;  %v4492_v41 = vld [vmem:[#allocation29_spill] sm:$0xff] }
 0x267   :  { %v1429_v35 = vsel %vm4487_vm13, %v3392_v52, %v4486_v37  ;;  %v1430_v14 = vsel %vm4489_vm9, %v3396_v3, %v4488_v34  ;;  %v1431_v20 = vsel %vm4491_vm7, %v3400_v0, %v4490_v61  ;;  %1489 = vst.msk [vmem:[%s4249_s5 + $0xf8] sm:$0xff] %vm662_vm3, %v1425_v10  ;;  %1490 = vst.msk [vmem:[%s4249_s5 + $0x100] sm:$0xff] %vm662_vm3, %v1426_v19  ;;  %v4493_v3 = vld [vmem:[#allocation15_spill] sm:$0xff]  ;;  %vm4494_vm14 = vcmp.ge.f32.partialorder %v4434_v16, 0.0  ;;  %v4497_v25 = vld [vmem:[#allocation17_spill] sm:$0xff] }
 0x268   :  { %1491 = vst.msk [vmem:[%s4249_s5 + $0x108] sm:$0xff] %vm662_vm3, %v1427_v17  ;;  %v1432_v52 = vsel %vm1304_vm15, %v3404_v7, %v4492_v41  ;;  %v1433_v0 = vsel %vm4494_vm14, %v4434_v16, %v4493_v3  ;;  %vm4496_vm12 = vcmp.ge.f32.partialorder %v4436_v21, 0.0  ;;  %vm4498_vm8 = vcmp.ge.f32.partialorder %v4438_v5, 0.0  ;;  %1492 = vst.msk [vmem:[%s4249_s5 + $0x110] sm:$0xff] %vm662_vm3, %v1428_v28  ;;  %v4522_v42 = vld [vmem:[#allocation14_spill] sm:$0xff]  ;;  %v4531_v60 = vld [vmem:[#allocation11_spill] sm:$0xff] }
 0x269   :  { %v1434_v32 = vsel %vm4496_vm12, %v4436_v21, %v4495_v62  ;;  %v1435_v58 = vsel %vm4498_vm8, %v4438_v5, %v4497_v25  ;;  %1493 = vst.msk [vmem:[%s4249_s5 + $0x118] sm:$0xff] %vm662_vm3, %v1429_v35  ;;  %1494 = vst.msk [vmem:[%s4249_s5 + $0x120] sm:$0xff] %vm662_vm3, %v1430_v14  ;;  %v1436_v7 = vsel %vm1308_vm0, %v4440_v55, %v3733_v57  ;;  %v4499_v21 = vld [vmem:[#allocation19_spill] sm:$0xff]  ;;  %vm4500_vm15 = vcmp.ge.f32.partialorder %v4441_v11, 0.0  ;;  %v4501_v5 = vld [vmem:[#allocation20_spill] sm:$0xff] }
 0x26a   :  { %1495 = vst.msk [vmem:[%s4249_s5 + $0x128] sm:$0xff] %vm662_vm3, %v1431_v20  ;;  %v1437_v16 = vsel %vm4500_vm15, %v4441_v11, %v4499_v21  ;;  %vm4502_vm11 = vcmp.ge.f32.partialorder %v4443_v31, 0.0  ;;  %vm4503_vm13 = vcmp.ge.f32.partialorder %v3432_v12, 0.0  ;;  %1496 = vst.msk [vmem:[%s4249_s5 + $0x130] sm:$0xff] %vm662_vm3, %v1432_v52  ;;  %v4504_v55 = vld [vmem:[#allocation2_spill] sm:$0xff]  ;;  %vm4505_vm0 = vcmp.ge.f32.partialorder %v3440_v54, 0.0 }
 0x26b   :  { %v1438_v47 = vsel %vm4502_vm11, %v4443_v31, %v4501_v5  ;;  %v1439_v48 = vsel %vm4503_vm13, %v3432_v12, %v3754_v29  ;;  %1497 = vst.msk [vmem:[%s4249_s5 + $0x138] sm:$0xff] %vm662_vm3, %v1433_v0  ;;  %1498 = vst.msk [vmem:[%s4249_s5 + $0x140] sm:$0xff] %vm662_vm3, %v1434_v32  ;;  %v1440_v12 = vsel %vm1312_vm1, %v3436_v24, %v3757_v13  ;;  %vm4506_vm9 = vcmp.ge.f32.partialorder %v3444_v46, 0.0  ;;  %v4507_v31 = vld [vmem:[#allocation3_spill] sm:$0xff]  ;;  %v4509_v24 = vld [vmem:[#allocation30_spill] sm:$0xff] }
 0x26c   :  { %1499 = vst.msk [vmem:[%s4249_s5 + $0x148] sm:$0xff] %vm662_vm3, %v1435_v58  ;;  %v1441_v11 = vsel %vm4505_vm0, %v3440_v54, %v4504_v55  ;;  %v1442_v57 = vsel %vm4506_vm9, %v3444_v46, %v3775_v50  ;;  %vm4508_vm7 = vcmp.ge.f32.partialorder %v4507_v31, 0.0  ;;  %1500 = vst.msk [vmem:[%s4249_s5 + $0x150] sm:$0xff] %vm662_vm3, %v1436_v7  ;;  %v1444_v54 = vsel %vm1316_vm2, %v3452_v15, %v4509_v24  ;;  %v4510_v46 = vld [vmem:[#allocation31_spill] sm:$0xff]  ;;  %v4517_v15 = vld [vmem:[#allocation5_spill] sm:$0xff] }
 0x26d   :  { %v1443_v29 = vsel %vm4508_vm7, %v4507_v31, %v3778_v49  ;;  %1501 = vst.msk [vmem:[%s4249_s5 + $0x158] sm:$0xff] %vm662_vm3, %v1437_v16  ;;  %1502 = vst.msk [vmem:[%s4249_s5 + $0x160] sm:$0xff] %vm662_vm3, %v1438_v47  ;;  %vm4511_vm1 = vcmp.ge.f32.partialorder %v3456_v30, 0.0  ;;  %v4512_v49 = vld [vmem:[#allocation32_spill] sm:$0xff]  ;;  %vm4513_vm14 = vcmp.ge.f32.partialorder %v3460_v27, 0.0  ;;  %vm4516_vm12 = vcmp.ge.f32.partialorder %v4515_v40, 0.0 }
 0x26e   :  { %1503 = vst.msk [vmem:[%s4249_s5 + $0x168] sm:$0xff] %vm662_vm3, %v1439_v48  ;;  %v1445_v13 = vsel %vm4511_vm1, %v3456_v30, %v4510_v46  ;;  %v1446_v50 = vsel %vm4513_vm14, %v3460_v27, %v4512_v49  ;;  %v1447_v43 = vsel %vm4516_vm12, %v4515_v40, %v4514_v53  ;;  %1504 = vst.msk [vmem:[%s4249_s5 + $0x170] sm:$0xff] %vm662_vm3, %v1440_v12  ;;  %v4518_v27 = vld [vmem:[#allocation6_spill] sm:$0xff]  ;;  %vm4519_vm2 = vcmp.ge.f32.partialorder %v4452_v38, 0.0 }
 0x26f   :  { %1505 = vst.msk [vmem:[%s4249_s5 + $0x178] sm:$0xff] %vm662_vm3, %v1441_v11  ;;  %1506 = vst.msk [vmem:[%s4249_s5 + $0x180] sm:$0xff] %vm662_vm3, %v1442_v57  ;;  %v1448_v30 = vsel %vm1320_vm4, %v4450_v26, %v4517_v15  ;;  %v1449_v2 = vsel %vm4519_vm2, %v4452_v38, %v4518_v27  ;;  %vm4521_vm8 = vcmp.ge.f32.partialorder %v4454_v9, 0.0  ;;  %vm4524_vm15 = vcmp.ge.f32.partialorder %v4523_v51, 0.0  ;;  %v4525_v38 = vld [vmem:[#allocation9_spill] sm:$0xff]  ;;  %v4528_v59 = vld [vmem:[#allocation18_spill] sm:$0xff] }
 0x270   :  { %1507 = vst.msk [vmem:[%s4249_s5 + $0x188] sm:$0xff] %vm662_vm3, %v1443_v29  ;;  %v1450_v18 = vsel %vm4521_vm8, %v4454_v9, %v4520_v8  ;;  %v1451_v23 = vsel %vm4524_vm15, %v4523_v51, %v4522_v42  ;;  %1508 = vst.msk [vmem:[%s4249_s5 + $0x190] sm:$0xff] %vm662_vm3, %v1444_v54  ;;  %v1452_v26 = vsel %vm1324_vm5, %v4459_v39, %v4525_v38  ;;  %v4526_v9 = vld [vmem:[#allocation10_spill] sm:$0xff]  ;;  %vm4527_vm4 = vcmp.ge.f32.partialorder %v4461_v45, 0.0  ;;  %v4533_v39 = vld [vmem:[#allocation12_spill] sm:$0xff] }
 0x271   :  { %1509 = vst.msk [vmem:[%s4249_s5 + $0x198] sm:$0xff] %vm662_vm3, %v1445_v13  ;;  %1510 = vst.msk [vmem:[%s4249_s5 + $0x1a0] sm:$0xff] %vm662_vm3, %v1446_v50  ;;  %v1453_v44 = vsel %vm4527_vm4, %v4461_v45, %v4526_v9  ;;  %vm4529_vm11 = vcmp.ge.f32.partialorder %v4528_v59, 0.0  ;;  %v4530_v63 = vld [vmem:[#allocation34_spill] sm:$0xff]  ;;  %vm4532_vm13 = vcmp.ge.f32.partialorder %v4531_v60, 0.0  ;;  %v1456_v45 = vsel %vm1328_vm6, %v4466_v36, %v4533_v39 }
 0x272   :  { %1511 = vst.msk [vmem:[%s4249_s5 + $0x1a8] sm:$0xff] %vm662_vm3, %v1447_v43  ;;  %v1454_v1 = vsel %vm4529_vm11, %v4528_v59, %v3859_v6  ;;  %v1455_v4 = vsel %vm4532_vm13, %v4531_v60, %v4530_v63  ;;  %1512 = vst.msk [vmem:[%s4249_s5 + $0x1b0] sm:$0xff] %vm662_vm3, %v1448_v30  ;;  %v1457_v6 = vsel %vm1329_vm10, %v4468_v56, %v3878_v33 }
 0x273   :  { %1513 = vst.msk [vmem:[%s4249_s5 + $0x1b8] sm:$0xff] %vm662_vm3, %v1449_v2  ;;  %1514 = vst.msk [vmem:[%s4249_s5 + $0x1c0] sm:$0xff] %vm662_vm3, %v1450_v18 }
 0x274   :  { %1515 = vst.msk [vmem:[%s4249_s5 + $0x1c8] sm:$0xff] %vm662_vm3, %v1451_v23  ;;  %1516 = vst.msk [vmem:[%s4249_s5 + $0x1d0] sm:$0xff] %vm662_vm3, %v1452_v26 }
 0x275   :  { %1517 = vst.msk [vmem:[%s4249_s5 + $0x1d8] sm:$0xff] %vm662_vm3, %v1453_v44  ;;  %1518 = vst.msk [vmem:[%s4249_s5 + $0x1e0] sm:$0xff] %vm662_vm3, %v1454_v1 }
 0x276   :  { %1519 = vst.msk [vmem:[%s4249_s5 + $0x1e8] sm:$0xff] %vm662_vm3, %v1455_v4  ;;  %1520 = vst.msk [vmem:[%s4249_s5 + $0x1f0] sm:$0xff] %vm662_vm3, %v1456_v45 }
 0x277   :  { %1521 = vst.msk [vmem:[%s4249_s5 + $0x1f8] sm:$0xff] %vm662_vm3, %v1457_v6 }

</bundles_post_ra>
